<compile_context>
chip_gen: v5e
topology: v5e:2x2
jax: 0.10.0
libtpu: 0.0.40
codegen_flags: <defaults>
</compile_context>

<pallas_src>
import functools

import numpy as np

import jax
import jax.numpy as jnp
from jax.experimental import pallas as pl
from jax.experimental.pallas import tpu as pltpu

EPS = 1e-5
NEG_SLOPE = 0.2


def _round_up(x, m):
    return -(-x // m) * m


def _res_block_kernel(x_ref, w_ref, bnp_ref, mask_ref, o_ref, ybuf, *, N, H, W):
    """x_ref: (C, LBUF) pre-padded flat input (per-image row stride Wp, image
    stride Hp*Wp, zero-padded tail).  o_ref: (C, Bk) flat output (Bk = lane-
    rounded N*Hp*Wp; garbage lanes included, wrapper slices them off)."""
    C, Bk = o_ref.shape
    Hp, Wp = H + 2, W + 2
    LBUF = ybuf.shape[1]
    inv_cnt = 1.0 / float(N * H * W)

    mask = mask_ref[...]                                   # (1, Bk) valid pixels

    def conv_bn(buf_ref, wbase, g, b):
        # 3x3 conv as 9 accumulated (C,C) x (C,Bk) MXU matmuls (no im2col
        # scratch); each RHS is a static lane-offset slice of the padded buffer.
        acc = jnp.zeros((C, Bk), jnp.float32)
        for k in range(9):
            dy, dx = divmod(k, 3)
            off = dy * Wp + dx
            acc = acc + jnp.dot(w_ref[wbase + k],
                                buf_ref[:, off:off + Bk],
                                preferred_element_type=jnp.float32)
        # one-pass masked batch statistics (training-mode BN, biased variance)
        am = acc * mask
        s = jnp.sum(am, axis=1, keepdims=True)             # (C, 1)
        ss = jnp.sum(am * acc, axis=1, keepdims=True)      # (C, 1)
        mean = s * inv_cnt
        var = jnp.maximum(ss * inv_cnt - mean * mean, 0.0)
        scale = jax.lax.rsqrt(var + EPS) * g
        return (acc - mean) * scale + b

    g1 = bnp_ref[:, 0:1]
    b1 = bnp_ref[:, 1:2]
    g2 = bnp_ref[:, 2:3]
    b2 = bnp_ref[:, 3:4]

    # conv1 -> BN1 -> LeakyReLU(0.2)
    y = conv_bn(x_ref, 0, g1, b1)
    y = jnp.where(y > 0, y, NEG_SLOPE * y)

    # Re-pad the activation for conv2 entirely in VMEM: masking zeroes the
    # garbage lanes (which land exactly on the padding ring after the +(Wp+1)
    # shift); only the head/tail strips outside the masked write need zeroing.
    ybuf[:, :Wp + 1] = jnp.zeros((C, Wp + 1), jnp.float32)
    ybuf[:, Wp + 1 + Bk:] = jnp.zeros((C, LBUF - (Wp + 1 + Bk)), jnp.float32)
    ybuf[:, Wp + 1:Wp + 1 + Bk] = y * mask

    # conv2 -> BN2, then residual add (residual = interior of the padded input)
    z = conv_bn(ybuf, 9, g2, b2)
    o_ref[...] = (z + x_ref[:, Wp + 1:Wp + 1 + Bk]).astype(o_ref.dtype)


def basic_res_block(x_nchw, params):
    """Forward of BasicResBlock.  x_nchw: (N, C, H, W) float32."""
    w1, g1, b1, w2, g2, b2 = params            # conv weights are HWIO (3,3,C,C)
    N, C, H, W = x_nchw.shape
    Hp, Wp = H + 2, W + 2
    B = N * Hp * Wp                            # flattened padded grid
    Bk = _round_up(B, 128)                     # lane-dense working width
    LBUF = _round_up(Bk + 2 * Wp + 2, 128)     # + max tap offset, lane-aligned

    # Wrapper-side layout plumbing (not compute): zero-pad, channels-first,
    # flatten spatial onto lanes, pad tail so every tap read stays in bounds.
    xp = jnp.pad(x_nchw.astype(jnp.float32), ((0, 0), (0, 0), (1, 1), (1, 1)))
    x_flat = jnp.transpose(xp, (1, 0, 2, 3)).reshape(C, B)
    x_flat = jnp.pad(x_flat, ((0, 0), (0, LBUF - B)))              # (C, LBUF)

    # Per-tap weight matrices (C_out, C_in), stacked as (18, C, C):
    # rows 0..8 = conv1 taps (dy,dx) row-major, rows 9..17 = conv2 taps.
    def tap_stack(w_hwio):
        return jnp.transpose(w_hwio, (0, 1, 3, 2)).reshape(9, C, C)

    w_all = jnp.concatenate([tap_stack(w1), tap_stack(w2)], axis=0)
    w_all = w_all.astype(jnp.float32)

    # Packed BN affine params: columns [gamma1, beta1, gamma2, beta2].
    bnp = jnp.stack([g1, b1, g2, b2], axis=1).astype(jnp.float32)  # (C, 4)

    # Compile-time mask of valid pixels on the lane-rounded flat padded grid.
    r = np.arange(Bk)
    rr = r % (Hp * Wp)
    valid = (r < B) & ((rr // Wp) < H) & ((rr % Wp) < W)
    mask = jnp.asarray(valid.astype(np.float32)).reshape(1, Bk)

    def full(shape):
        nd = len(shape)
        return pl.BlockSpec(tuple(shape), lambda i, nd=nd: (0,) * nd)

    out_flat = pl.pallas_call(
        functools.partial(_res_block_kernel, N=N, H=H, W=W),
        out_shape=jax.ShapeDtypeStruct((C, Bk), jnp.float32),
        grid=(1,),
        in_specs=[full((C, LBUF)), full((18, C, C)), full((C, 4)),
                  full((1, Bk))],
        out_specs=full((C, Bk)),
        scratch_shapes=[pltpu.VMEM((C, LBUF), jnp.float32)],   # padded activation
        compiler_params=pltpu.CompilerParams(
            dimension_semantics=("arbitrary",)),
    )(x_flat, w_all, bnp, mask)

    # Drop the rounded lanes / garbage columns / padding rows, back to NCHW.
    out = out_flat[:, :B].reshape(C, N, Hp, Wp)[:, :, :H, :W]
    return jnp.transpose(out, (1, 0, 2, 3))


def reference(x_nchw, params):
    """Pure-JAX reference matching the PyTorch forward (training-mode BN)."""
    w1, g1, b1, w2, g2, b2 = params

    def conv(x, w_hwio):
        return jax.lax.conv_general_dilated(
            x, w_hwio, window_strides=(1, 1), padding=((1, 1), (1, 1)),
            dimension_numbers=('NCHW', 'HWIO', 'NCHW'))

    def bn(x, g, b):
        mean = jnp.mean(x, axis=(0, 2, 3), keepdims=True)
        var = jnp.mean((x - mean) ** 2, axis=(0, 2, 3), keepdims=True)
        return ((x - mean) * jax.lax.rsqrt(var + EPS)
                * g.reshape(1, -1, 1, 1) + b.reshape(1, -1, 1, 1))

    y = bn(conv(x_nchw, w1), g1, b1)
    y = jnp.where(y > 0, y, NEG_SLOPE * y)
    z = bn(conv(y, w2), g2, b2)
    return z + x_nchw


if __name__ == "__main__":
    N, C, H, W = 2, 4, 16, 16
    key = jax.random.PRNGKey(0)
    kx, kw1, kw2 = jax.random.split(key, 3)

    x = jax.random.normal(kx, (N, C, H, W), dtype=jnp.float32)
    # Deterministic parameter init (HWIO conv weights; BN gamma=1, beta=0).
    w1 = jax.random.normal(kw1, (3, 3, C, C), dtype=jnp.float32) * 0.1
    w2 = jax.random.normal(kw2, (3, 3, C, C), dtype=jnp.float32) * 0.1
    g1 = jnp.ones((C,), jnp.float32)
    b1 = jnp.zeros((C,), jnp.float32)
    g2 = jnp.ones((C,), jnp.float32)
    b2 = jnp.zeros((C,), jnp.float32)
    params = (w1, g1, b1, w2, g2, b2)

    out = jax.block_until_ready(basic_res_block(x, params))
    ref = jax.block_until_ready(reference(x, params))

    assert out.shape == (N, C, H, W)
    err = float(jnp.max(jnp.abs(out - ref)))
    assert err < 2e-4, f"max abs err = {err}"
    print("KERNEL_OK")
</pallas_src>

<mosaic_0001>
module attributes {stable_mosaic.version = 11 : i64} {
  func.func @_res_block_kernel(%arg0: i32, %arg1: memref<4x896xf32, #tpu.memory_space<vmem>>, %arg2: memref<18x4x4xf32, #tpu.memory_space<vmem>>, %arg3: memref<4x4xf32, #tpu.memory_space<vmem>>, %arg4: memref<1x768xf32, #tpu.memory_space<vmem>>, %arg5: memref<4x768xf32, #tpu.memory_space<vmem>>, %arg6: memref<4x896xf32, #tpu.memory_space<vmem>>) attributes {dimension_semantics = [#tpu.dimension_semantics<arbitrary>], iteration_bounds = array<i64: 1>, scalar_prefetch = 0 : i64, scratch_operands = 1 : i64, tpu.core_type = #tpu.core_type<tc>, window_params = [{pipeline_mode = #tpu.pipeline_mode<synchronous>, transform_indices = @transform_0, window_bounds = array<i64: 4, 896>}, {pipeline_mode = #tpu.pipeline_mode<synchronous>, transform_indices = @transform_1, window_bounds = array<i64: 18, 4, 4>}, {pipeline_mode = #tpu.pipeline_mode<synchronous>, transform_indices = @transform_2, window_bounds = array<i64: 4, 4>}, {pipeline_mode = #tpu.pipeline_mode<synchronous>, transform_indices = @transform_3, window_bounds = array<i64: 1, 768>}, {pipeline_mode = #tpu.pipeline_mode<synchronous>, transform_indices = @transform_4, window_bounds = array<i64: 4, 768>}]} {
    %c0 = arith.constant 0 : index
    %c0_0 = arith.constant 0 : index
    %0 = vector.load %arg4[%c0, %c0_0] : memref<1x768xf32, #tpu.memory_space<vmem>>, vector<1x768xf32>
    %c0_1 = arith.constant 0 : index
    %c0_2 = arith.constant 0 : index
    %1 = vector.load %arg3[%c0_1, %c0_2] : memref<4x4xf32, #tpu.memory_space<vmem>>, vector<4x1xf32>
    %c0_3 = arith.constant 0 : index
    %c1 = arith.constant 1 : index
    %2 = vector.load %arg3[%c0_3, %c1] : memref<4x4xf32, #tpu.memory_space<vmem>>, vector<4x1xf32>
    %c0_4 = arith.constant 0 : index
    %c2 = arith.constant 2 : index
    %3 = vector.load %arg3[%c0_4, %c2] : memref<4x4xf32, #tpu.memory_space<vmem>>, vector<4x1xf32>
    %c0_5 = arith.constant 0 : index
    %c3 = arith.constant 3 : index
    %4 = vector.load %arg3[%c0_5, %c3] : memref<4x4xf32, #tpu.memory_space<vmem>>, vector<4x1xf32>
    %cst = arith.constant 0.000000e+00 : f32
    %5 = vector.broadcast %cst : f32 to vector<4x768xf32>
    %c0_6 = arith.constant 0 : index
    %c0_7 = arith.constant 0 : index
    %c0_8 = arith.constant 0 : index
    %6 = vector.load %arg2[%c0_6, %c0_7, %c0_8] : memref<18x4x4xf32, #tpu.memory_space<vmem>>, vector<1x4x4xf32>
    %7 = vector.shape_cast %6 : vector<1x4x4xf32> to vector<4x4xf32>
    %c0_9 = arith.constant 0 : index
    %c0_10 = arith.constant 0 : index
    %8 = vector.load %arg1[%c0_9, %c0_10] : memref<4x896xf32, #tpu.memory_space<vmem>>, vector<4x768xf32>
    %cst_11 = arith.constant dense<0.000000e+00> : vector<4x768xf32>
    %9 = tpu.matmul %7, %8, %cst_11 {dimension_numbers = #tpu.dot_dimension_numbers<[1], [0], [0], [1], [0, 0, 1, 1], [], []>} : vector<4x4xf32>, vector<4x768xf32>, vector<4x768xf32> -> vector<4x768xf32>
    %10 = arith.addf %5, %9 : vector<4x768xf32>
    %c1_12 = arith.constant 1 : index
    %c0_13 = arith.constant 0 : index
    %c0_14 = arith.constant 0 : index
    %11 = vector.load %arg2[%c1_12, %c0_13, %c0_14] : memref<18x4x4xf32, #tpu.memory_space<vmem>>, vector<1x4x4xf32>
    %12 = vector.shape_cast %11 : vector<1x4x4xf32> to vector<4x4xf32>
    %c0_15 = arith.constant 0 : index
    %c1_16 = arith.constant 1 : index
    %13 = vector.load %arg1[%c0_15, %c1_16] : memref<4x896xf32, #tpu.memory_space<vmem>>, vector<4x768xf32>
    %cst_17 = arith.constant dense<0.000000e+00> : vector<4x768xf32>
    %14 = tpu.matmul %12, %13, %cst_17 {dimension_numbers = #tpu.dot_dimension_numbers<[1], [0], [0], [1], [0, 0, 1, 1], [], []>} : vector<4x4xf32>, vector<4x768xf32>, vector<4x768xf32> -> vector<4x768xf32>
    %15 = arith.addf %10, %14 : vector<4x768xf32>
    %c2_18 = arith.constant 2 : index
    %c0_19 = arith.constant 0 : index
    %c0_20 = arith.constant 0 : index
    %16 = vector.load %arg2[%c2_18, %c0_19, %c0_20] : memref<18x4x4xf32, #tpu.memory_space<vmem>>, vector<1x4x4xf32>
    %17 = vector.shape_cast %16 : vector<1x4x4xf32> to vector<4x4xf32>
    %c0_21 = arith.constant 0 : index
    %c2_22 = arith.constant 2 : index
    %18 = vector.load %arg1[%c0_21, %c2_22] : memref<4x896xf32, #tpu.memory_space<vmem>>, vector<4x768xf32>
    %cst_23 = arith.constant dense<0.000000e+00> : vector<4x768xf32>
    %19 = tpu.matmul %17, %18, %cst_23 {dimension_numbers = #tpu.dot_dimension_numbers<[1], [0], [0], [1], [0, 0, 1, 1], [], []>} : vector<4x4xf32>, vector<4x768xf32>, vector<4x768xf32> -> vector<4x768xf32>
    %20 = arith.addf %15, %19 : vector<4x768xf32>
    %c3_24 = arith.constant 3 : index
    %c0_25 = arith.constant 0 : index
    %c0_26 = arith.constant 0 : index
    %21 = vector.load %arg2[%c3_24, %c0_25, %c0_26] : memref<18x4x4xf32, #tpu.memory_space<vmem>>, vector<1x4x4xf32>
    %22 = vector.shape_cast %21 : vector<1x4x4xf32> to vector<4x4xf32>
    %c0_27 = arith.constant 0 : index
    %c18 = arith.constant 18 : index
    %23 = vector.load %arg1[%c0_27, %c18] : memref<4x896xf32, #tpu.memory_space<vmem>>, vector<4x768xf32>
    %cst_28 = arith.constant dense<0.000000e+00> : vector<4x768xf32>
    %24 = tpu.matmul %22, %23, %cst_28 {dimension_numbers = #tpu.dot_dimension_numbers<[1], [0], [0], [1], [0, 0, 1, 1], [], []>} : vector<4x4xf32>, vector<4x768xf32>, vector<4x768xf32> -> vector<4x768xf32>
    %25 = arith.addf %20, %24 : vector<4x768xf32>
    %c4 = arith.constant 4 : index
    %c0_29 = arith.constant 0 : index
    %c0_30 = arith.constant 0 : index
    %26 = vector.load %arg2[%c4, %c0_29, %c0_30] : memref<18x4x4xf32, #tpu.memory_space<vmem>>, vector<1x4x4xf32>
    %27 = vector.shape_cast %26 : vector<1x4x4xf32> to vector<4x4xf32>
    %c0_31 = arith.constant 0 : index
    %c19 = arith.constant 19 : index
    %28 = vector.load %arg1[%c0_31, %c19] : memref<4x896xf32, #tpu.memory_space<vmem>>, vector<4x768xf32>
    %cst_32 = arith.constant dense<0.000000e+00> : vector<4x768xf32>
    %29 = tpu.matmul %27, %28, %cst_32 {dimension_numbers = #tpu.dot_dimension_numbers<[1], [0], [0], [1], [0, 0, 1, 1], [], []>} : vector<4x4xf32>, vector<4x768xf32>, vector<4x768xf32> -> vector<4x768xf32>
    %30 = arith.addf %25, %29 : vector<4x768xf32>
    %c5 = arith.constant 5 : index
    %c0_33 = arith.constant 0 : index
    %c0_34 = arith.constant 0 : index
    %31 = vector.load %arg2[%c5, %c0_33, %c0_34] : memref<18x4x4xf32, #tpu.memory_space<vmem>>, vector<1x4x4xf32>
    %32 = vector.shape_cast %31 : vector<1x4x4xf32> to vector<4x4xf32>
    %c0_35 = arith.constant 0 : index
    %c20 = arith.constant 20 : index
    %33 = vector.load %arg1[%c0_35, %c20] : memref<4x896xf32, #tpu.memory_space<vmem>>, vector<4x768xf32>
    %cst_36 = arith.constant dense<0.000000e+00> : vector<4x768xf32>
    %34 = tpu.matmul %32, %33, %cst_36 {dimension_numbers = #tpu.dot_dimension_numbers<[1], [0], [0], [1], [0, 0, 1, 1], [], []>} : vector<4x4xf32>, vector<4x768xf32>, vector<4x768xf32> -> vector<4x768xf32>
    %35 = arith.addf %30, %34 : vector<4x768xf32>
    %c6 = arith.constant 6 : index
    %c0_37 = arith.constant 0 : index
    %c0_38 = arith.constant 0 : index
    %36 = vector.load %arg2[%c6, %c0_37, %c0_38] : memref<18x4x4xf32, #tpu.memory_space<vmem>>, vector<1x4x4xf32>
    %37 = vector.shape_cast %36 : vector<1x4x4xf32> to vector<4x4xf32>
    %c0_39 = arith.constant 0 : index
    %c36 = arith.constant 36 : index
    %38 = vector.load %arg1[%c0_39, %c36] : memref<4x896xf32, #tpu.memory_space<vmem>>, vector<4x768xf32>
    %cst_40 = arith.constant dense<0.000000e+00> : vector<4x768xf32>
    %39 = tpu.matmul %37, %38, %cst_40 {dimension_numbers = #tpu.dot_dimension_numbers<[1], [0], [0], [1], [0, 0, 1, 1], [], []>} : vector<4x4xf32>, vector<4x768xf32>, vector<4x768xf32> -> vector<4x768xf32>
    %40 = arith.addf %35, %39 : vector<4x768xf32>
    %c7 = arith.constant 7 : index
    %c0_41 = arith.constant 0 : index
    %c0_42 = arith.constant 0 : index
    %41 = vector.load %arg2[%c7, %c0_41, %c0_42] : memref<18x4x4xf32, #tpu.memory_space<vmem>>, vector<1x4x4xf32>
    %42 = vector.shape_cast %41 : vector<1x4x4xf32> to vector<4x4xf32>
    %c0_43 = arith.constant 0 : index
    %c37 = arith.constant 37 : index
    %43 = vector.load %arg1[%c0_43, %c37] : memref<4x896xf32, #tpu.memory_space<vmem>>, vector<4x768xf32>
    %cst_44 = arith.constant dense<0.000000e+00> : vector<4x768xf32>
    %44 = tpu.matmul %42, %43, %cst_44 {dimension_numbers = #tpu.dot_dimension_numbers<[1], [0], [0], [1], [0, 0, 1, 1], [], []>} : vector<4x4xf32>, vector<4x768xf32>, vector<4x768xf32> -> vector<4x768xf32>
    %45 = arith.addf %40, %44 : vector<4x768xf32>
    %c8 = arith.constant 8 : index
    %c0_45 = arith.constant 0 : index
    %c0_46 = arith.constant 0 : index
    %46 = vector.load %arg2[%c8, %c0_45, %c0_46] : memref<18x4x4xf32, #tpu.memory_space<vmem>>, vector<1x4x4xf32>
    %47 = vector.shape_cast %46 : vector<1x4x4xf32> to vector<4x4xf32>
    %c0_47 = arith.constant 0 : index
    %c38 = arith.constant 38 : index
    %48 = vector.load %arg1[%c0_47, %c38] : memref<4x896xf32, #tpu.memory_space<vmem>>, vector<4x768xf32>
    %cst_48 = arith.constant dense<0.000000e+00> : vector<4x768xf32>
    %49 = tpu.matmul %47, %48, %cst_48 {dimension_numbers = #tpu.dot_dimension_numbers<[1], [0], [0], [1], [0, 0, 1, 1], [], []>} : vector<4x4xf32>, vector<4x768xf32>, vector<4x768xf32> -> vector<4x768xf32>
    %50 = arith.addf %45, %49 : vector<4x768xf32>
    %51 = vector.broadcast %0 : vector<1x768xf32> to vector<4x768xf32>
    %52 = arith.mulf %50, %51 : vector<4x768xf32>
    %cst_49 = arith.constant dense<0.000000e+00> : vector<4xf32>
    %53 = vector.multi_reduction <add>, %52, %cst_49 [1] : vector<4x768xf32> to vector<4xf32>
    %54 = vector.shape_cast %53 : vector<4xf32> to vector<4x1xf32>
    %55 = arith.mulf %52, %50 : vector<4x768xf32>
    %cst_50 = arith.constant dense<0.000000e+00> : vector<4xf32>
    %56 = vector.multi_reduction <add>, %55, %cst_50 [1] : vector<4x768xf32> to vector<4xf32>
    %57 = vector.shape_cast %56 : vector<4xf32> to vector<4x1xf32>
    %cst_51 = arith.constant 0.001953125 : f32
    %58 = vector.broadcast %cst_51 : f32 to vector<4x1xf32>
    %59 = arith.mulf %54, %58 : vector<4x1xf32>
    %cst_52 = arith.constant 0.001953125 : f32
    %60 = vector.broadcast %cst_52 : f32 to vector<4x1xf32>
    %61 = arith.mulf %57, %60 : vector<4x1xf32>
    %62 = arith.mulf %59, %59 : vector<4x1xf32>
    %63 = arith.subf %61, %62 : vector<4x1xf32>
    %cst_53 = arith.constant 0.000000e+00 : f32
    %64 = vector.broadcast %cst_53 : f32 to vector<4x1xf32>
    %65 = arith.maximumf %63, %64 : vector<4x1xf32>
    %cst_54 = arith.constant 9.99999974E-6 : f32
    %66 = vector.broadcast %cst_54 : f32 to vector<4x1xf32>
    %67 = arith.addf %65, %66 : vector<4x1xf32>
    %68 = math.rsqrt %67 : vector<4x1xf32>
    %69 = arith.mulf %68, %1 : vector<4x1xf32>
    %70 = vector.broadcast %59 : vector<4x1xf32> to vector<4x768xf32>
    %71 = arith.subf %50, %70 : vector<4x768xf32>
    %72 = vector.broadcast %69 : vector<4x1xf32> to vector<4x768xf32>
    %73 = arith.mulf %71, %72 : vector<4x768xf32>
    %74 = vector.broadcast %2 : vector<4x1xf32> to vector<4x768xf32>
    %75 = arith.addf %73, %74 : vector<4x768xf32>
    %cst_55 = arith.constant 0.000000e+00 : f32
    %76 = vector.broadcast %cst_55 : f32 to vector<4x768xf32>
    %77 = arith.cmpf ogt, %75, %76 : vector<4x768xf32>
    %cst_56 = arith.constant 2.000000e-01 : f32
    %78 = vector.broadcast %cst_56 : f32 to vector<4x768xf32>
    %79 = arith.mulf %78, %75 : vector<4x768xf32>
    %80 = arith.select %77, %75, %79 : vector<4x768xi1>, vector<4x768xf32>
    %cst_57 = arith.constant 0.000000e+00 : f32
    %81 = vector.broadcast %cst_57 : f32 to vector<4x19xf32>
    %c0_58 = arith.constant 0 : index
    %c0_59 = arith.constant 0 : index
    %82 = vector.load %arg6[%c0_58, %c0_59] : memref<4x896xf32, #tpu.memory_space<vmem>>, vector<4x19xf32>
    tpu.vector_store %arg6[%c0_58, %c0_59], %81 {strides = array<i32>} : memref<4x896xf32, #tpu.memory_space<vmem>>, vector<4x19xf32>,
    %cst_60 = arith.constant 0.000000e+00 : f32
    %83 = vector.broadcast %cst_60 : f32 to vector<4x109xf32>
    %c0_61 = arith.constant 0 : index
    %c787 = arith.constant 787 : index
    %84 = vector.load %arg6[%c0_61, %c787] : memref<4x896xf32, #tpu.memory_space<vmem>>, vector<4x109xf32>
    tpu.vector_store %arg6[%c0_61, %c787], %83 {strides = array<i32>} : memref<4x896xf32, #tpu.memory_space<vmem>>, vector<4x109xf32>,
    %85 = vector.broadcast %0 : vector<1x768xf32> to vector<4x768xf32>
    %86 = arith.mulf %80, %85 : vector<4x768xf32>
    %c0_62 = arith.constant 0 : index
    %c19_63 = arith.constant 19 : index
    %87 = vector.load %arg6[%c0_62, %c19_63] : memref<4x896xf32, #tpu.memory_space<vmem>>, vector<4x768xf32>
    tpu.vector_store %arg6[%c0_62, %c19_63], %86 {strides = array<i32>} : memref<4x896xf32, #tpu.memory_space<vmem>>, vector<4x768xf32>,
    %cst_64 = arith.constant 0.000000e+00 : f32
    %88 = vector.broadcast %cst_64 : f32 to vector<4x768xf32>
    %c9 = arith.constant 9 : index
    %c0_65 = arith.constant 0 : index
    %c0_66 = arith.constant 0 : index
    %89 = vector.load %arg2[%c9, %c0_65, %c0_66] : memref<18x4x4xf32, #tpu.memory_space<vmem>>, vector<1x4x4xf32>
    %90 = vector.shape_cast %89 : vector<1x4x4xf32> to vector<4x4xf32>
    %c0_67 = arith.constant 0 : index
    %c0_68 = arith.constant 0 : index
    %91 = vector.load %arg6[%c0_67, %c0_68] : memref<4x896xf32, #tpu.memory_space<vmem>>, vector<4x768xf32>
    %cst_69 = arith.constant dense<0.000000e+00> : vector<4x768xf32>
    %92 = tpu.matmul %90, %91, %cst_69 {dimension_numbers = #tpu.dot_dimension_numbers<[1], [0], [0], [1], [0, 0, 1, 1], [], []>} : vector<4x4xf32>, vector<4x768xf32>, vector<4x768xf32> -> vector<4x768xf32>
    %93 = arith.addf %88, %92 : vector<4x768xf32>
    %c10 = arith.constant 10 : index
    %c0_70 = arith.constant 0 : index
    %c0_71 = arith.constant 0 : index
    %94 = vector.load %arg2[%c10, %c0_70, %c0_71] : memref<18x4x4xf32, #tpu.memory_space<vmem>>, vector<1x4x4xf32>
    %95 = vector.shape_cast %94 : vector<1x4x4xf32> to vector<4x4xf32>
    %c0_72 = arith.constant 0 : index
    %c1_73 = arith.constant 1 : index
    %96 = vector.load %arg6[%c0_72, %c1_73] : memref<4x896xf32, #tpu.memory_space<vmem>>, vector<4x768xf32>
    %cst_74 = arith.constant dense<0.000000e+00> : vector<4x768xf32>
    %97 = tpu.matmul %95, %96, %cst_74 {dimension_numbers = #tpu.dot_dimension_numbers<[1], [0], [0], [1], [0, 0, 1, 1], [], []>} : vector<4x4xf32>, vector<4x768xf32>, vector<4x768xf32> -> vector<4x768xf32>
    %98 = arith.addf %93, %97 : vector<4x768xf32>
    %c11 = arith.constant 11 : index
    %c0_75 = arith.constant 0 : index
    %c0_76 = arith.constant 0 : index
    %99 = vector.load %arg2[%c11, %c0_75, %c0_76] : memref<18x4x4xf32, #tpu.memory_space<vmem>>, vector<1x4x4xf32>
    %100 = vector.shape_cast %99 : vector<1x4x4xf32> to vector<4x4xf32>
    %c0_77 = arith.constant 0 : index
    %c2_78 = arith.constant 2 : index
    %101 = vector.load %arg6[%c0_77, %c2_78] : memref<4x896xf32, #tpu.memory_space<vmem>>, vector<4x768xf32>
    %cst_79 = arith.constant dense<0.000000e+00> : vector<4x768xf32>
    %102 = tpu.matmul %100, %101, %cst_79 {dimension_numbers = #tpu.dot_dimension_numbers<[1], [0], [0], [1], [0, 0, 1, 1], [], []>} : vector<4x4xf32>, vector<4x768xf32>, vector<4x768xf32> -> vector<4x768xf32>
    %103 = arith.addf %98, %102 : vector<4x768xf32>
    %c12 = arith.constant 12 : index
    %c0_80 = arith.constant 0 : index
    %c0_81 = arith.constant 0 : index
    %104 = vector.load %arg2[%c12, %c0_80, %c0_81] : memref<18x4x4xf32, #tpu.memory_space<vmem>>, vector<1x4x4xf32>
    %105 = vector.shape_cast %104 : vector<1x4x4xf32> to vector<4x4xf32>
    %c0_82 = arith.constant 0 : index
    %c18_83 = arith.constant 18 : index
    %106 = vector.load %arg6[%c0_82, %c18_83] : memref<4x896xf32, #tpu.memory_space<vmem>>, vector<4x768xf32>
    %cst_84 = arith.constant dense<0.000000e+00> : vector<4x768xf32>
    %107 = tpu.matmul %105, %106, %cst_84 {dimension_numbers = #tpu.dot_dimension_numbers<[1], [0], [0], [1], [0, 0, 1, 1], [], []>} : vector<4x4xf32>, vector<4x768xf32>, vector<4x768xf32> -> vector<4x768xf32>
    %108 = arith.addf %103, %107 : vector<4x768xf32>
    %c13 = arith.constant 13 : index
    %c0_85 = arith.constant 0 : index
    %c0_86 = arith.constant 0 : index
    %109 = vector.load %arg2[%c13, %c0_85, %c0_86] : memref<18x4x4xf32, #tpu.memory_space<vmem>>, vector<1x4x4xf32>
    %110 = vector.shape_cast %109 : vector<1x4x4xf32> to vector<4x4xf32>
    %c0_87 = arith.constant 0 : index
    %c19_88 = arith.constant 19 : index
    %111 = vector.load %arg6[%c0_87, %c19_88] : memref<4x896xf32, #tpu.memory_space<vmem>>, vector<4x768xf32>
    %cst_89 = arith.constant dense<0.000000e+00> : vector<4x768xf32>
    %112 = tpu.matmul %110, %111, %cst_89 {dimension_numbers = #tpu.dot_dimension_numbers<[1], [0], [0], [1], [0, 0, 1, 1], [], []>} : vector<4x4xf32>, vector<4x768xf32>, vector<4x768xf32> -> vector<4x768xf32>
    %113 = arith.addf %108, %112 : vector<4x768xf32>
    %c14 = arith.constant 14 : index
    %c0_90 = arith.constant 0 : index
    %c0_91 = arith.constant 0 : index
    %114 = vector.load %arg2[%c14, %c0_90, %c0_91] : memref<18x4x4xf32, #tpu.memory_space<vmem>>, vector<1x4x4xf32>
    %115 = vector.shape_cast %114 : vector<1x4x4xf32> to vector<4x4xf32>
    %c0_92 = arith.constant 0 : index
    %c20_93 = arith.constant 20 : index
    %116 = vector.load %arg6[%c0_92, %c20_93] : memref<4x896xf32, #tpu.memory_space<vmem>>, vector<4x768xf32>
    %cst_94 = arith.constant dense<0.000000e+00> : vector<4x768xf32>
    %117 = tpu.matmul %115, %116, %cst_94 {dimension_numbers = #tpu.dot_dimension_numbers<[1], [0], [0], [1], [0, 0, 1, 1], [], []>} : vector<4x4xf32>, vector<4x768xf32>, vector<4x768xf32> -> vector<4x768xf32>
    %118 = arith.addf %113, %117 : vector<4x768xf32>
    %c15 = arith.constant 15 : index
    %c0_95 = arith.constant 0 : index
    %c0_96 = arith.constant 0 : index
    %119 = vector.load %arg2[%c15, %c0_95, %c0_96] : memref<18x4x4xf32, #tpu.memory_space<vmem>>, vector<1x4x4xf32>
    %120 = vector.shape_cast %119 : vector<1x4x4xf32> to vector<4x4xf32>
    %c0_97 = arith.constant 0 : index
    %c36_98 = arith.constant 36 : index
    %121 = vector.load %arg6[%c0_97, %c36_98] : memref<4x896xf32, #tpu.memory_space<vmem>>, vector<4x768xf32>
    %cst_99 = arith.constant dense<0.000000e+00> : vector<4x768xf32>
    %122 = tpu.matmul %120, %121, %cst_99 {dimension_numbers = #tpu.dot_dimension_numbers<[1], [0], [0], [1], [0, 0, 1, 1], [], []>} : vector<4x4xf32>, vector<4x768xf32>, vector<4x768xf32> -> vector<4x768xf32>
    %123 = arith.addf %118, %122 : vector<4x768xf32>
    %c16 = arith.constant 16 : index
    %c0_100 = arith.constant 0 : index
    %c0_101 = arith.constant 0 : index
    %124 = vector.load %arg2[%c16, %c0_100, %c0_101] : memref<18x4x4xf32, #tpu.memory_space<vmem>>, vector<1x4x4xf32>
    %125 = vector.shape_cast %124 : vector<1x4x4xf32> to vector<4x4xf32>
    %c0_102 = arith.constant 0 : index
    %c37_103 = arith.constant 37 : index
    %126 = vector.load %arg6[%c0_102, %c37_103] : memref<4x896xf32, #tpu.memory_space<vmem>>, vector<4x768xf32>
    %cst_104 = arith.constant dense<0.000000e+00> : vector<4x768xf32>
    %127 = tpu.matmul %125, %126, %cst_104 {dimension_numbers = #tpu.dot_dimension_numbers<[1], [0], [0], [1], [0, 0, 1, 1], [], []>} : vector<4x4xf32>, vector<4x768xf32>, vector<4x768xf32> -> vector<4x768xf32>
    %128 = arith.addf %123, %127 : vector<4x768xf32>
    %c17 = arith.constant 17 : index
    %c0_105 = arith.constant 0 : index
    %c0_106 = arith.constant 0 : index
    %129 = vector.load %arg2[%c17, %c0_105, %c0_106] : memref<18x4x4xf32, #tpu.memory_space<vmem>>, vector<1x4x4xf32>
    %130 = vector.shape_cast %129 : vector<1x4x4xf32> to vector<4x4xf32>
    %c0_107 = arith.constant 0 : index
    %c38_108 = arith.constant 38 : index
    %131 = vector.load %arg6[%c0_107, %c38_108] : memref<4x896xf32, #tpu.memory_space<vmem>>, vector<4x768xf32>
    %cst_109 = arith.constant dense<0.000000e+00> : vector<4x768xf32>
    %132 = tpu.matmul %130, %131, %cst_109 {dimension_numbers = #tpu.dot_dimension_numbers<[1], [0], [0], [1], [0, 0, 1, 1], [], []>} : vector<4x4xf32>, vector<4x768xf32>, vector<4x768xf32> -> vector<4x768xf32>
    %133 = arith.addf %128, %132 : vector<4x768xf32>
    %134 = vector.broadcast %0 : vector<1x768xf32> to vector<4x768xf32>
    %135 = arith.mulf %133, %134 : vector<4x768xf32>
    %cst_110 = arith.constant dense<0.000000e+00> : vector<4xf32>
    %136 = vector.multi_reduction <add>, %135, %cst_110 [1] : vector<4x768xf32> to vector<4xf32>
    %137 = vector.shape_cast %136 : vector<4xf32> to vector<4x1xf32>
    %138 = arith.mulf %135, %133 : vector<4x768xf32>
    %cst_111 = arith.constant dense<0.000000e+00> : vector<4xf32>
    %139 = vector.multi_reduction <add>, %138, %cst_111 [1] : vector<4x768xf32> to vector<4xf32>
    %140 = vector.shape_cast %139 : vector<4xf32> to vector<4x1xf32>
    %cst_112 = arith.constant 0.001953125 : f32
    %141 = vector.broadcast %cst_112 : f32 to vector<4x1xf32>
    %142 = arith.mulf %137, %141 : vector<4x1xf32>
    %cst_113 = arith.constant 0.001953125 : f32
    %143 = vector.broadcast %cst_113 : f32 to vector<4x1xf32>
    %144 = arith.mulf %140, %143 : vector<4x1xf32>
    %145 = arith.mulf %142, %142 : vector<4x1xf32>
    %146 = arith.subf %144, %145 : vector<4x1xf32>
    %cst_114 = arith.constant 0.000000e+00 : f32
    %147 = vector.broadcast %cst_114 : f32 to vector<4x1xf32>
    %148 = arith.maximumf %146, %147 : vector<4x1xf32>
    %cst_115 = arith.constant 9.99999974E-6 : f32
    %149 = vector.broadcast %cst_115 : f32 to vector<4x1xf32>
    %150 = arith.addf %148, %149 : vector<4x1xf32>
    %151 = math.rsqrt %150 : vector<4x1xf32>
    %152 = arith.mulf %151, %3 : vector<4x1xf32>
    %153 = vector.broadcast %142 : vector<4x1xf32> to vector<4x768xf32>
    %154 = arith.subf %133, %153 : vector<4x768xf32>
    %155 = vector.broadcast %152 : vector<4x1xf32> to vector<4x768xf32>
    %156 = arith.mulf %154, %155 : vector<4x768xf32>
    %157 = vector.broadcast %4 : vector<4x1xf32> to vector<4x768xf32>
    %158 = arith.addf %156, %157 : vector<4x768xf32>
    %c0_116 = arith.constant 0 : index
    %c19_117 = arith.constant 19 : index
    %159 = vector.load %arg1[%c0_116, %c19_117] : memref<4x896xf32, #tpu.memory_space<vmem>>, vector<4x768xf32>
    %160 = arith.addf %158, %159 : vector<4x768xf32>
    %c0_118 = arith.constant 0 : index
    %c0_119 = arith.constant 0 : index
    %161 = vector.load %arg5[%c0_118, %c0_119] : memref<4x768xf32, #tpu.memory_space<vmem>>, vector<4x768xf32>
    tpu.vector_store %arg5[%c0_118, %c0_119], %160 {strides = array<i32>} : memref<4x768xf32, #tpu.memory_space<vmem>>, vector<4x768xf32>,
    return
  }
  func.func @transform_0(%arg0: i32) -> (i32, i32) {
    %c0_i32 = arith.constant 0 : i32
    %c0_i32_0 = arith.constant 0 : i32
    %c0_i32_1 = arith.constant 0 : i32
    return %c0_i32, %c0_i32_0 : i32, i32
  }
  func.func @transform_1(%arg0: i32) -> (i32, i32, i32) {
    %c0_i32 = arith.constant 0 : i32
    %c0_i32_0 = arith.constant 0 : i32
    %c0_i32_1 = arith.constant 0 : i32
    %c0_i32_2 = arith.constant 0 : i32
    return %c0_i32, %c0_i32_0, %c0_i32_1 : i32, i32, i32
  }
  func.func @transform_2(%arg0: i32) -> (i32, i32) {
    %c0_i32 = arith.constant 0 : i32
    %c0_i32_0 = arith.constant 0 : i32
    %c0_i32_1 = arith.constant 0 : i32
    return %c0_i32, %c0_i32_0 : i32, i32
  }
  func.func @transform_3(%arg0: i32) -> (i32, i32) {
    %c0_i32 = arith.constant 0 : i32
    %c0_i32_0 = arith.constant 0 : i32
    %c0_i32_1 = arith.constant 0 : i32
    return %c0_i32, %c0_i32_0 : i32, i32
  }
  func.func @transform_4(%arg0: i32) -> (i32, i32) {
    %c0_i32 = arith.constant 0 : i32
    %c0_i32_0 = arith.constant 0 : i32
    %c0_i32_1 = arith.constant 0 : i32
    return %c0_i32, %c0_i32_0 : i32, i32
  }
}

</mosaic_0001>

<bundles_post_ra>
// kernel: tpu_custom_call.1
= control target key start
LH: loop header
LB: loop body
LE: loop exit
PB: predicated region body
PF: predicated region fallthrough
CT: control target
= control target key end

     0   :  { %s4764_s0 = inlined_call_operand.vmem [shape: f32[4,896], index: 0, kind: input, shape index: {}]   ;;  %s4765_s1 = inlined_call_operand.vmem [shape: f32[18,4,4], index: 1, kind: input, shape index: {}]   ;;  %s4766_s2 = inlined_call_operand.vmem [shape: f32[4,4], index: 2, kind: input, shape index: {}]   ;;  %s4767_s3 = inlined_call_operand.vmem [shape: f32[1,768], index: 3, kind: input, shape index: {}]   ;;  %s4768_s4 = inlined_call_operand.hbm [shape: f32[4,768], index: 4, kind: output, shape index: {}]  }
   0x1   :  { %v3943_v0 = vld [vmem:[%s4764_s0 + $0x8] sm:$0xff]  ;;  %v3948_v1 = vld [vmem:[%s4764_s0] sm:$0xff]  ;;  %v3953_v2 = vld [vmem:[%s4764_s0 + $0x10] sm:$0xff] }
   0x2   :  { %36 = vst [vmem:[#allocation1 + $0x10] ss:$2 sm:$0xff] %v3943_v0  ;;  %v29_v3 = vld [vmem:[%s4764_s0 + $0x18] sm:$0xf] }
   0x3   :  { %34 = vst [vmem:[#allocation1] ss:$2 sm:$0xff] %v3948_v1 }
   0x4   :  { %9 = vsyncpa [#allocation4], 0  ;;  %38 = vst [vmem:[#allocation1 + $0x20] ss:$2 sm:$0xff] %v3953_v2  ;;  %s3900_s23 = smov 127   ;;  %s3901_s26 = smov 126  }
   0x5   :  { %40 = vst [vmem:[#allocation1 + $0x30] ss:$2 sm:$0xff] %v29_v3  ;;  %v360_v10 = vld [vmem:[%s4764_s0 + $0x18] sm:$0xf]  ;;  %s3902_s29 = smov 110   ;;  %s3903_s8 = smov 109  }
   0x6   :  { %v546_v26 = vld [vmem:[%s4764_s0 + $0x18] sm:$0xf]  ;;  %s3904_s9 = smov 108   ;;  %s3905_s14 = smov 92   ;;  %vm73_vm0 = vcmask 1043456   ;;  %vm62_vm1 = vcmask 1039360  }
   0x7   :  { %v732_v39 = vld [vmem:[%s4764_s0 + $0x18] sm:$0xf]  ;;  %s3906_s15 = smov 91   ;;  %vm69_vm2 = vcmask 31744   ;;  %s3907_s20 = smov 90   ;;  %vm393_vm3 = vcmask 1031168  }
   0x8   :  { %v918_v43 = vld [vmem:[%s4764_s0 + $0x18] sm:$0xf]  ;;  %vm579_vm4 = vcmask 900096   ;;  %vm765_vm5 = vcmask 891904   ;;  %vm951_vm6 = vcmask 883712   ;;  %vm1137_vm7 = vcmask 752640  }
   0x9   :  { %v43_v4 = vld.sshfl [vmem:[#allocation1 + $0x10] sm:$0xff pattern:$0x75316420]  ;;  %v44_v5 = vld.sshfl [vmem:[#allocation1 + $0x18] sm:$0xff pattern:$0x75316420] }
   0xa   :  { %52 = vrot.lane.b32.xlu0 %v43_v4, %s3900_s23  ;;  %v41_v6 = vld.sshfl [vmem:[#allocation1] sm:$0xff pattern:$0x75316420]  ;;  %v42_v7 = vld.sshfl [vmem:[#allocation1 + $0x8] sm:$0xff pattern:$0x75316420] }
   0xb   :  { %48 = vrot.lane.b32.xlu1 %v41_v6, %s3900_s23  ;;  %v45_v8 = vld.sshfl [vmem:[#allocation1 + $0x20] sm:$0xff pattern:$0x75316420]  ;;  %211 = vst [vmem:[#allocation1 + $0x10] ss:$2 sm:$0xff] %v3943_v0  ;;  %vm1323_vm8 = vcmask 744448  }
   0xc   :  { %56 = vrot.lane.b32.xlu2 %v45_v8, %s3900_s23  ;;  %v46_v9 = vld.sshfl [vmem:[#allocation1 + $0x28] sm:$0xff pattern:$0x75316420]  ;;  %209 = vst [vmem:[#allocation1] ss:$2 sm:$0xff] %v3948_v1  ;;  %vm1509_vm9 = vcmask 736256  }
   0xd   :  { %v47_v11 = vld.sshfl [vmem:[#allocation1 + $0x30] sm:$0xff pattern:$0x75316420]  ;;  %213 = vst [vmem:[#allocation1 + $0x20] ss:$2 sm:$0xff] %v3953_v2  ;;  %vm1771_vm13 = vcmask 150528  }
   0xe   :  { %371 = vst [vmem:[#allocation1 + $0x30] ss:$2 sm:$0xff] %v360_v10  ;;  %v1104_v57 = vld [vmem:[%s4764_s0 + $0x18] sm:$0xf]  ;;  %vm1773_vm14 = vcmask 1043608   ;;  %s3911_s22 = smov 19  }
   0xf   :  { %v1290_v62 = vld [vmem:[%s4764_s0 + $0x18] sm:$0xf] }
  0x12   :  { %54 = vrot.lane.b32.xlu0 %v44_v5, %s3900_s23  ;;  %v3971_v12 = vld.sshfl [vmem:[#allocation1 + $0x10] sm:$0xff pattern:$0x75316420]  ;;  %v3973_v13 = vld.sshfl [vmem:[#allocation1 + $0x18] sm:$0xff pattern:$0x75316420] }
  0x13   :  { %50 = vrot.lane.b32.xlu1 %v42_v7, %s3900_s23  ;;  %367 = vst [vmem:[#allocation1 + $0x10] ss:$2 sm:$0xff] %v3943_v0  ;;  %v3978_v14 = vld.sshfl [vmem:[#allocation1] sm:$0xff pattern:$0x75316420] }
  0x14   :  { %58 = vrot.lane.b32.xlu2 %v46_v9, %s3900_s23  ;;  %v3980_v15 = vld.sshfl [vmem:[#allocation1 + $0x8] sm:$0xff pattern:$0x75316420]  ;;  %v3983_v16 = vld.sshfl [vmem:[#allocation1 + $0x20] sm:$0xff pattern:$0x75316420] }
  0x15   :  { %365 = vst [vmem:[#allocation1] ss:$2 sm:$0xff] %v3948_v1  ;;  %v3985_v17 = vld.sshfl [vmem:[#allocation1 + $0x28] sm:$0xff pattern:$0x75316420] }
  0x16   :  { %369 = vst [vmem:[#allocation1 + $0x20] ss:$2 sm:$0xff] %v3953_v2  ;;  %v378_v27 = vld.sshfl [vmem:[#allocation1 + $0x30] sm:$0xff pattern:$0x75316420] }
  0x17   :  { %557 = vst [vmem:[#allocation1 + $0x30] ss:$2 sm:$0xff] %v546_v26 }
  0x1a   :  { %60 = vrot.lane.b32.xlu0 %v47_v11, %s3900_s23  ;;  %v374_v18 = vld.sshfl [vmem:[#allocation1 + $0x10] sm:$0xff pattern:$0x75316420]  ;;  %v375_v19 = vld.sshfl [vmem:[#allocation1 + $0x18] sm:$0xff pattern:$0x75316420] }
  0x1b   :  { %383 = vrot.lane.b32.xlu1 %v374_v18, %s3901_s26  ;;  %553 = vst [vmem:[#allocation1 + $0x10] ss:$2 sm:$0xff] %v3943_v0  ;;  %v3616_v18 = vld [vmem:[%s4765_s1 + $0x4] sm:$0xf] }
  0x1c   :  { %v373_v20 = vld.sshfl [vmem:[#allocation1 + $0x8] sm:$0xff pattern:$0x75316420]  ;;  %v372_v21 = vld.sshfl [vmem:[#allocation1] sm:$0xff pattern:$0x75316420]  ;;  %385 = vrot.lane.b32.xlu2 %v375_v19, %s3901_s26 }
  0x1d   :  { %551 = vst [vmem:[#allocation1] ss:$2 sm:$0xff] %v3948_v1  ;;  %v376_v22 = vld.sshfl [vmem:[#allocation1 + $0x20] sm:$0xff pattern:$0x75316420] }
  0x1e   :  { %v377_v23 = vld.sshfl [vmem:[#allocation1 + $0x28] sm:$0xff pattern:$0x75316420]  ;;  %v564_v38 = vld.sshfl [vmem:[#allocation1 + $0x30] sm:$0xff pattern:$0x75316420] }
  0x1f   :  { %555 = vst [vmem:[#allocation1 + $0x20] ss:$2 sm:$0xff] %v3953_v2 }
  0x20   :  { %743 = vst [vmem:[#allocation1 + $0x30] ss:$2 sm:$0xff] %v732_v39  ;;  %v3641_v39 = vld [vmem:[%s4765_s1 + $0x8] sm:$0xf] }
  0x22   :  { %379 = vrot.lane.b32.xlu0 %v372_v21, %s3901_s26  ;;  %v560_v24 = vld.sshfl [vmem:[#allocation1 + $0x10] sm:$0xff pattern:$0x75316420]  ;;  %v561_v25 = vld.sshfl [vmem:[#allocation1 + $0x18] sm:$0xff pattern:$0x75316420] }
  0x23   :  { %381 = vrot.lane.b32.xlu1 %v373_v20, %s3901_s26  ;;  %739 = vst [vmem:[#allocation1 + $0x10] ss:$2 sm:$0xff] %v3943_v0 }
  0x24   :  { %387 = vrot.lane.b32.xlu2 %v376_v22, %s3901_s26  ;;  %v559_v28 = vld.sshfl [vmem:[#allocation1 + $0x8] sm:$0xff pattern:$0x75316420]  ;;  %v558_v31 = vld.sshfl [vmem:[#allocation1] sm:$0xff pattern:$0x75316420] }
  0x25   :  { %737 = vst [vmem:[#allocation1] ss:$2 sm:$0xff] %v3948_v1 }
  0x26   :  { %v563_v29 = vld.sshfl [vmem:[#allocation1 + $0x28] sm:$0xff pattern:$0x75316420]  ;;  %v562_v30 = vld.sshfl [vmem:[#allocation1 + $0x20] sm:$0xff pattern:$0x75316420] }
  0x27   :  { %741 = vst [vmem:[#allocation1 + $0x20] ss:$2 sm:$0xff] %v3953_v2  ;;  %v750_v41 = vld.sshfl [vmem:[#allocation1 + $0x30] sm:$0xff pattern:$0x75316420] }
  0x28   :  { %929 = vst [vmem:[#allocation1 + $0x30] ss:$2 sm:$0xff] %v918_v43 }
  0x2a   :  { %565 = vrot.lane.b32.xlu0 %v558_v31, %s3902_s29  ;;  %v747_v32 = vld.sshfl [vmem:[#allocation1 + $0x18] sm:$0xff pattern:$0x75316420]  ;;  %v746_v33 = vld.sshfl [vmem:[#allocation1 + $0x10] sm:$0xff pattern:$0x75316420] }
  0x2b   :  { %567 = vrot.lane.b32.xlu1 %v559_v28, %s3902_s29  ;;  %925 = vst [vmem:[#allocation1 + $0x10] ss:$2 sm:$0xff] %v3943_v0  ;;  %v20_v28 = vld [vmem:[%s4765_s1] sm:$0xf] }
  0x2c   :  { %389 = vrot.lane.b32.xlu2 %v377_v23, %s3901_s26  ;;  %v745_v35 = vld.sshfl [vmem:[#allocation1 + $0x8] sm:$0xff pattern:$0x75316420]  ;;  %v744_v36 = vld.sshfl [vmem:[#allocation1] sm:$0xff pattern:$0x75316420] }
  0x2d   :  { %923 = vst [vmem:[#allocation1] ss:$2 sm:$0xff] %v3948_v1 }
  0x2e   :  { %v749_v34 = vld.sshfl [vmem:[#allocation1 + $0x28] sm:$0xff pattern:$0x75316420]  ;;  %v748_v37 = vld.sshfl [vmem:[#allocation1 + $0x20] sm:$0xff pattern:$0x75316420] }
  0x2f   :  { %927 = vst [vmem:[#allocation1 + $0x20] ss:$2 sm:$0xff] %v3953_v2  ;;  %v936_v54 = vld.sshfl [vmem:[#allocation1 + $0x30] sm:$0xff pattern:$0x75316420] }
  0x30   :  { %1115 = vst [vmem:[#allocation1 + $0x30] ss:$2 sm:$0xff] %v1104_v57  ;;  %v3667_v57 = vld [vmem:[%s4765_s1 + $0x10] sm:$0xf] }
  0x32   :  { %569 = vrot.lane.b32.xlu0 %v560_v24, %s3902_s29  ;;  %v933_v44 = vld.sshfl [vmem:[#allocation1 + $0x18] sm:$0xff pattern:$0x75316420]  ;;  %v932_v45 = vld.sshfl [vmem:[#allocation1 + $0x10] sm:$0xff pattern:$0x75316420] }
  0x33   :  { %391 = vrot.lane.b32.xlu1 %v378_v27, %s3901_s26  ;;  %1111 = vst [vmem:[#allocation1 + $0x10] ss:$2 sm:$0xff] %v3943_v0 }
  0x34   :  { %573 = vrot.lane.b32.xlu2 %v562_v30, %s3902_s29  ;;  %v931_v40 = vld.sshfl [vmem:[#allocation1 + $0x8] sm:$0xff pattern:$0x75316420]  ;;  %v930_v42 = vld.sshfl [vmem:[#allocation1] sm:$0xff pattern:$0x75316420] }
  0x35   :  { %1109 = vst [vmem:[#allocation1] ss:$2 sm:$0xff] %v3948_v1 }
  0x36   :  { %v934_v46 = vld.sshfl [vmem:[#allocation1 + $0x20] sm:$0xff pattern:$0x75316420]  ;;  %v935_v47 = vld.sshfl [vmem:[#allocation1 + $0x28] sm:$0xff pattern:$0x75316420] }
  0x37   :  { %1113 = vst [vmem:[#allocation1 + $0x20] ss:$2 sm:$0xff] %v3953_v2  ;;  %v1122_v63 = vld.sshfl [vmem:[#allocation1 + $0x30] sm:$0xff pattern:$0x75316420] }
  0x38   :  { %1301 = vst [vmem:[#allocation1 + $0x30] ss:$2 sm:$0xff] %v1290_v62 }
  0x3a   :  { %575 = vrot.lane.b32.xlu0 %v563_v29, %s3902_s29  ;;  %v1118_v50 = vld.sshfl [vmem:[#allocation1 + $0x10] sm:$0xff pattern:$0x75316420]  ;;  %v1119_v51 = vld.sshfl [vmem:[#allocation1 + $0x18] sm:$0xff pattern:$0x75316420] }
  0x3b   :  { %571 = vrot.lane.b32.xlu1 %v561_v25, %s3902_s29  ;;  %1297 = vst [vmem:[#allocation1 + $0x10] ss:$2 sm:$0xff] %v3943_v0 }
  0x3c   :  { %577 = vrot.lane.b32.xlu2 %v564_v38, %s3902_s29  ;;  %v1116_v48 = vld.sshfl [vmem:[#allocation1] sm:$0xff pattern:$0x75316420]  ;;  %v1117_v49 = vld.sshfl [vmem:[#allocation1 + $0x8] sm:$0xff pattern:$0x75316420] }
  0x3d   :  { %1295 = vst [vmem:[#allocation1] ss:$2 sm:$0xff] %v3948_v1 }
  0x3e   :  { %v1121_v52 = vld.sshfl [vmem:[#allocation1 + $0x28] sm:$0xff pattern:$0x75316420]  ;;  %v1120_v53 = vld.sshfl [vmem:[#allocation1 + $0x20] sm:$0xff pattern:$0x75316420] }
  0x3f   :  { %1299 = vst [vmem:[#allocation1 + $0x20] ss:$2 sm:$0xff] %v3953_v2 }
  0x42   :  { %755 = vrot.lane.b32.xlu0 %v746_v33, %s3903_s8  ;;  %v1304_v55 = vld.sshfl [vmem:[#allocation1 + $0x10] sm:$0xff pattern:$0x75316420]  ;;  %v1305_v56 = vld.sshfl [vmem:[#allocation1 + $0x18] sm:$0xff pattern:$0x75316420] }
  0x43   :  { %757 = vrot.lane.b32.xlu1 %v747_v32, %s3903_s8  ;;  %1483 = vst [vmem:[#allocation1 + $0x10] ss:$2 sm:$0xff] %v3943_v0 }
  0x44   :  { %751 = vrot.lane.b32.xlu2 %v744_v36, %s3903_s8  ;;  %v1302_v58 = vld.sshfl [vmem:[#allocation1] sm:$0xff pattern:$0x75316420]  ;;  %v1303_v60 = vld.sshfl [vmem:[#allocation1 + $0x8] sm:$0xff pattern:$0x75316420] }
  0x45   :  { %1481 = vst [vmem:[#allocation1] ss:$2 sm:$0xff] %v3948_v1  ;;  %v1308_v1 = vld.sshfl [vmem:[#allocation1 + $0x30] sm:$0xff pattern:$0x75316420] }
  0x46   :  { %v1306_v59 = vld.sshfl [vmem:[#allocation1 + $0x20] sm:$0xff pattern:$0x75316420]  ;;  %v1307_v61 = vld.sshfl [vmem:[#allocation1 + $0x28] sm:$0xff pattern:$0x75316420] }
  0x47   :  { %1485 = vst [vmem:[#allocation1 + $0x20] ss:$2 sm:$0xff] %v3953_v2  ;;  %v1476_v2 = vld [vmem:[%s4764_s0 + $0x18] sm:$0xf] }
  0x48   :  { %1487 = vst [vmem:[#allocation1 + $0x30] ss:$2 sm:$0xff] %v1476_v2  ;;  %v3680_v2 = vld [vmem:[%s4765_s1 + $0x14] sm:$0xf] }
  0x4a   :  { %753 = vrot.lane.b32.xlu0 %v745_v35, %s3903_s8  ;;  %v1490_v23 = vld.sshfl [vmem:[#allocation1 + $0x10] sm:$0xff pattern:$0x75316420]  ;;  %v1491_v24 = vld.sshfl [vmem:[#allocation1 + $0x18] sm:$0xff pattern:$0x75316420] }
  0x4b   :  { %759 = vrot.lane.b32.xlu1 %v748_v37, %s3903_s8 }
  0x4c   :  { %937 = vrot.lane.b32.xlu2 %v930_v42, %s3904_s9  ;;  %v1488_v29 = vld.sshfl [vmem:[#allocation1] sm:$0xff pattern:$0x75316420] }
  0x4e   :  { %v1493_v36 = vld.sshfl [vmem:[#allocation1 + $0x28] sm:$0xff pattern:$0x75316420] }
  0x4f   :  { %v1494_v35 = vld.sshfl [vmem:[#allocation1 + $0x30] sm:$0xff pattern:$0x75316420] }
  0x52   :  { %939 = vrot.lane.b32.xlu0 %v931_v40, %s3904_s9 }
  0x53   :  { %761 = vrot.lane.b32.xlu1 %v749_v34, %s3903_s8 }
  0x54   :  { %941 = vrot.lane.b32.xlu2 %v932_v45, %s3904_s9  ;;  %v3654_v45 = vld [vmem:[%s4765_s1 + $0xc] sm:$0xf] }
  0x5a   :  { %763 = vrot.lane.b32.xlu0 %v750_v41, %s3903_s8 }
  0x5b   :  { %945 = vrot.lane.b32.xlu1 %v934_v46, %s3904_s9 }
  0x5c   :  { %947 = vrot.lane.b32.xlu2 %v935_v47, %s3904_s9 }
  0x62   :  { %943 = vrot.lane.b32.xlu0 %v933_v44, %s3904_s9 }
  0x63   :  { %949 = vrot.lane.b32.xlu1 %v936_v54, %s3904_s9 }
  0x64   :  { %1127 = vrot.lane.b32.xlu2 %v1118_v50, %s3905_s14 }
  0x66   :  { %v57_v0 = vpop.permute.xlu2 %56 }
  0x6a   :  { %1129 = vrot.lane.b32.xlu0 %v1119_v51, %s3905_s14 }
  0x6b   :  { %1123 = vrot.lane.b32.xlu1 %v1116_v48, %s3905_s14 }
  0x6c   :  { %1125 = vrot.lane.b32.xlu2 %v1117_v49, %s3905_s14 }
  0x6e   :  { %v59_v3 = vpop.permute.xlu2 %58 }
  0x6f   :  { %v67_v22 = vsel %vm62_vm1, %v57_v0, %v59_v3 }
  0x72   :  { %1131 = vrot.lane.b32.xlu0 %v1120_v53, %s3905_s14 }
  0x73   :  { %1309 = vrot.lane.b32.xlu1 %v1302_v58, %s3906_s15 }
  0x74   :  { %1311 = vrot.lane.b32.xlu2 %v1303_v60, %s3906_s15 }
  0x76   :  { %v386_v4 = vpop.permute.xlu2 %385 }
  0x7a   :  { %1133 = vrot.lane.b32.xlu0 %v1121_v52, %s3905_s14 }
  0x7b   :  { %1313 = vrot.lane.b32.xlu1 %v1304_v55, %s3906_s15 }
  0x7c   :  { %v53_v5 = vpop.permute.xlu0 %52  ;;  %1135 = vrot.lane.b32.xlu2 %v1122_v63, %s3905_s14 }
  0x7d   :  { %v49_v6 = vpop.permute.xlu1 %48 }
  0x7e   :  { %v388_v7 = vpop.permute.xlu2 %387 }
  0x82   :  { %1317 = vrot.lane.b32.xlu0 %v1306_v59, %s3906_s15 }
  0x83   :  { %1319 = vrot.lane.b32.xlu1 %v1307_v61, %s3906_s15 }
  0x84   :  { %v55_v8 = vpop.permute.xlu0 %54  ;;  %1315 = vrot.lane.b32.xlu2 %v1305_v56, %s3906_s15 }
  0x85   :  { %v51_v9 = vpop.permute.xlu1 %50  ;;  %v65_v10 = vsel %vm62_vm1, %v53_v5, %v55_v8  ;;  %v66_v11 = vsel %vm62_vm1, %v55_v8, %v57_v0 }
  0x86   :  { %v63_v19 = vsel %vm62_vm1, %v49_v6, %v51_v9  ;;  %v64_v20 = vsel %vm62_vm1, %v51_v9, %v53_v5  ;;  %3621 = vmatpush.msk.msra.mxu2 %vm73_vm0, %v65_v10  ;;  %3623 = vmatpush.msk.msra.mxu3 %vm73_vm0, %v66_v11  ;;  %v4075_v21 = vpop.permute.xlu2 %389 }
  0x87   :  { %3617 = vmatpush.msk.msra.mxu0 %vm73_vm0, %v63_v19  ;;  %3619 = vmatpush.msk.msra.mxu1 %vm73_vm0, %v64_v20  ;;  %v398_v31 = vsel %vm393_vm3, %v388_v7, %v4075_v21 }
  0x88   :  { %3618 = vmatmul.msk.f32.vlgmr.msra.gmra.mxu0 %vm69_vm2, %v3616_v18  ;;  %3622 = vmatmul.msk.f32.vlgmr.msra.gmra.mxu2 %vm69_vm2, %v3616_v18 }
  0x89   :  { %3624 = vmatmul.msk.f32.vlgmr.msra.gmra.mxu3 %vm69_vm2, %v3616_v18  ;;  %3625 = vmatpush.msk.msrb.mxu0 %vm73_vm0, %v67_v22 }
  0x8a   :  { %3620 = vmatmul.msk.f32.vlgmr.msra.gmra.mxu1 %vm69_vm2, %v3616_v18  ;;  %1321 = vrot.lane.b32.xlu0 %v1308_v1, %s3906_s15 }
  0x8b   :  { %1499 = vrot.lane.b32.xlu1 %v1490_v23, %s3907_s20  ;;  %3629 = vmatpush.msk.msrb.mxu2 %vm73_vm0, %v3978_v14 }
  0x8c   :  { %v61_v25 = vpop.permute.xlu0 %60  ;;  %3631 = vmatpush.msk.msrb.mxu3 %vm73_vm0, %v3980_v15  ;;  %3633 = vmatpush.msk.msra.mxu0 %vm73_vm0, %v3971_v12  ;;  %v1492_v12 = vld.sshfl [vmem:[#allocation1 + $0x20] sm:$0xff pattern:$0x75316420] }
  0x8d   :  { %3637 = vmatpush.msk.msra.mxu2 %vm73_vm0, %v3983_v16  ;;  %v384_v26 = vpop.permute.xlu1 %383  ;;  %v68_v27 = vsel %vm62_vm1, %v59_v3, %v61_v25  ;;  %1501 = vrot.lane.b32.xlu2 %v1491_v24, %s3907_s20  ;;  %v397_v16 = vsel %vm393_vm3, %v386_v4, %v388_v7 }
  0x8e   :  { %3639 = vmatpush.msk.msra.mxu3 %vm73_vm0, %v3985_v17  ;;  %v396_v14 = vsel %vm393_vm3, %v384_v26, %v386_v4  ;;  %3627 = vmatpush.msk.msrb.mxu1 %vm73_vm0, %v68_v27  ;;  %v574_v15 = vpop.permute.xlu2 %573  ;;  %v1489_v17 = vld.sshfl [vmem:[#allocation1 + $0x8] sm:$0xff pattern:$0x75316420]  ;;  %v3693_v27 = vld [vmem:[%s4765_s1 + $0x18] sm:$0xf] }
  0x90   :  { %3635 = vmatpush.msk.msra.mxu1 %vm73_vm0, %v3973_v13  ;;  %3626 = vmatmul.msk.f32.vlgmr.msrb.gmra.mxu0 %vm69_vm2, %v3616_v18 }
  0x91   :  { %3630 = vmatmul.msk.f32.vlgmr.msrb.gmra.mxu2 %vm69_vm2, %v20_v28  ;;  %3632 = vmatmul.msk.f32.vlgmr.msrb.gmra.mxu3 %vm69_vm2, %v20_v28 }
  0x92   :  { %3646 = vmatpush.msk.msrb.mxu2 %vm73_vm0, %v396_v14  ;;  %3648 = vmatpush.msk.msrb.mxu3 %vm73_vm0, %v397_v16 }
  0x93   :  { %3628 = vmatmul.msk.f32.vlgmr.msrb.gmra.mxu1 %vm69_vm2, %v3616_v18  ;;  %1497 = vrot.lane.b32.xlu1 %v1489_v17, %s3907_s20 }
  0x94   :  { %1495 = vrot.lane.b32.xlu0 %v1488_v29, %s3907_s20  ;;  %v380_v13 = vpop.permute.xlu0 %379 }
  0x95   :  { %v382_v30 = vpop.permute.xlu1 %381  ;;  %1503 = vrot.lane.b32.xlu2 %v1492_v12, %s3907_s20 }
  0x96   :  { %v395_v32 = vsel %vm393_vm3, %v382_v30, %v384_v26  ;;  %v394_v33 = vsel %vm393_vm3, %v380_v13, %v382_v30  ;;  %v578_v34 = vpop.permute.xlu2 %577  ;;  %v3706_v13 = vld [vmem:[%s4765_s1 + $0x1c] sm:$0xf] }
  0x97   :  { %3642 = vmatpush.msk.msrb.mxu0 %vm73_vm0, %v394_v33  ;;  %3644 = vmatpush.msk.msrb.mxu1 %vm73_vm0, %v395_v32 }
  0x98   :  { %3634 = vmatmul.msk.f32.vlgmr.msra.gmra.mxu0 %vm69_vm2, %v20_v28 }
  0x99   :  { %3638 = vmatmul.msk.f32.vlgmr.msra.gmra.mxu2 %vm69_vm2, %v20_v28  ;;  %3640 = vmatmul.msk.f32.vlgmr.msra.gmra.mxu3 %vm69_vm2, %v20_v28 }
  0x9a   :  { %3650 = vmatpush.msk.msra.mxu0 %vm73_vm0, %v398_v31 }
  0x9b   :  { %3636 = vmatmul.msk.f32.vlgmr.msra.gmra.mxu1 %vm69_vm2, %v20_v28  ;;  %1507 = vrot.lane.b32.xlu1 %v1494_v35, %s3907_s20 }
  0x9c   :  { %1505 = vrot.lane.b32.xlu0 %v1493_v36, %s3907_s20  ;;  %v566_v37 = vpop.permute.xlu0 %565 }
  0x9d   :  { %v568_v38 = vpop.permute.xlu1 %567 }
  0x9e   :  { %v580_v40 = vsel %vm579_vm4, %v566_v37, %v568_v38  ;;  %v752_v41 = vpop.permute.xlu2 %751 }
  0x9f   :  { %3655 = vmatpush.msk.msra.mxu2 %vm73_vm0, %v580_v40 }
  0xa0   :  { %3643 = vmatmul.msk.f32.vlgmr.msrb.gmra.mxu0 %vm69_vm2, %v3641_v39 }
  0xa1   :  { %3647 = vmatmul.msk.f32.vlgmr.msrb.gmra.mxu2 %vm69_vm2, %v3641_v39  ;;  %3649 = vmatmul.msk.f32.vlgmr.msrb.gmra.mxu3 %vm69_vm2, %v3641_v39 }
  0xa3   :  { %3645 = vmatmul.msk.f32.vlgmr.msrb.gmra.mxu1 %vm69_vm2, %v3641_v39 }
  0xa4   :  { %v570_v42 = vpop.permute.xlu0 %569 }
  0xa5   :  { %v392_v43 = vpop.permute.xlu1 %391  ;;  %v581_v44 = vsel %vm579_vm4, %v568_v38, %v570_v42 }
  0xa6   :  { %v399_v46 = vsel %vm393_vm3, %v4075_v21, %v392_v43  ;;  %3657 = vmatpush.msk.msra.mxu3 %vm73_vm0, %v581_v44  ;;  %v938_v47 = vpop.permute.xlu2 %937 }
  0xa7   :  { %3652 = vmatpush.msk.msra.mxu1 %vm73_vm0, %v399_v46 }
  0xa8   :  { %3651 = vmatmul.msk.f32.vlgmr.msra.gmra.mxu0 %vm69_vm2, %v3641_v39 }
  0xa9   :  { %3656 = vmatmul.msk.f32.vlgmr.msra.gmra.mxu2 %vm69_vm2, %v3654_v45  ;;  %3658 = vmatmul.msk.f32.vlgmr.msra.gmra.mxu3 %vm69_vm2, %v3654_v45 }
  0xab   :  { %3653 = vmatmul.msk.f32.vlgmr.msra.gmra.mxu1 %vm69_vm2, %v3641_v39 }
  0xac   :  { %v576_v48 = vpop.permute.xlu0 %575 }
  0xad   :  { %v572_v49 = vpop.permute.xlu1 %571  ;;  %v584_v50 = vsel %vm579_vm4, %v574_v15, %v576_v48  ;;  %v585_v51 = vsel %vm579_vm4, %v576_v48, %v578_v34  ;;  %v3719_v48 = vld [vmem:[%s4765_s1 + $0x20] sm:$0xf] }
  0xae   :  { %v582_v52 = vsel %vm579_vm4, %v570_v42, %v572_v49  ;;  %v583_v53 = vsel %vm579_vm4, %v572_v49, %v574_v15  ;;  %3663 = vmatpush.msk.msrb.mxu2 %vm73_vm0, %v584_v50  ;;  %3665 = vmatpush.msk.msrb.mxu3 %vm73_vm0, %v585_v51  ;;  %v942_v54 = vpop.permute.xlu2 %941 }
  0xaf   :  { %3659 = vmatpush.msk.msrb.mxu0 %vm73_vm0, %v582_v52  ;;  %3661 = vmatpush.msk.msrb.mxu1 %vm73_vm0, %v583_v53 }
  0xb0   :  { %3660 = vmatmul.msk.f32.vlgmr.msrb.gmra.mxu0 %vm69_vm2, %v3654_v45 }
  0xb1   :  { %3664 = vmatmul.msk.f32.vlgmr.msrb.gmra.mxu2 %vm69_vm2, %v3654_v45  ;;  %3666 = vmatmul.msk.f32.vlgmr.msrb.gmra.mxu3 %vm69_vm2, %v3654_v45 }
  0xb3   :  { %3662 = vmatmul.msk.f32.vlgmr.msrb.gmra.mxu1 %vm69_vm2, %v3654_v45 }
  0xb4   :  { %v756_v55 = vpop.permute.xlu0 %755 }
  0xb5   :  { %v758_v56 = vpop.permute.xlu1 %757 }
  0xb6   :  { %v768_v58 = vsel %vm765_vm5, %v756_v55, %v758_v56  ;;  %v948_v59 = vpop.permute.xlu2 %947 }
  0xb7   :  { %3672 = vmatpush.msk.msra.mxu2 %vm73_vm0, %v768_v58 }
  0xb9   :  { %3673 = vmatmul.msk.f32.vlgmr.msra.gmra.mxu2 %vm69_vm2, %v3667_v57 }
  0xbc   :  { %v754_v60 = vpop.permute.xlu0 %753 }
  0xbd   :  { %v760_v61 = vpop.permute.xlu1 %759  ;;  %v766_v62 = vsel %vm765_vm5, %v752_v41, %v754_v60  ;;  %v767_v63 = vsel %vm765_vm5, %v754_v60, %v756_v55 }
  0xbe   :  { %v769_v0 = vsel %vm765_vm5, %v758_v56, %v760_v61  ;;  %3668 = vmatpush.msk.msra.mxu0 %vm73_vm0, %v766_v62  ;;  %3670 = vmatpush.msk.msra.mxu1 %vm73_vm0, %v767_v63  ;;  %v1128_v3 = vpop.permute.xlu2 %1127 }
  0xbf   :  { %3674 = vmatpush.msk.msra.mxu3 %vm73_vm0, %v769_v0  ;;  %3669 = vmatmul.msk.f32.vlgmr.msra.gmra.mxu0 %vm69_vm2, %v3667_v57 }
  0xc0   :  { %3671 = vmatmul.msk.f32.vlgmr.msra.gmra.mxu1 %vm69_vm2, %v3667_v57  ;;  %3675 = vmatmul.msk.f32.vlgmr.msra.gmra.mxu3 %vm69_vm2, %v3667_v57 }
  0xc4   :  { %v940_v1 = vpop.permute.xlu0 %939 }
  0xc5   :  { %v762_v4 = vpop.permute.xlu1 %761  ;;  %v952_v5 = vsel %vm951_vm6, %v938_v47, %v940_v1  ;;  %v953_v6 = vsel %vm951_vm6, %v940_v1, %v942_v54 }
  0xc6   :  { %v770_v7 = vsel %vm765_vm5, %v760_v61, %v762_v4  ;;  %3681 = vmatpush.msk.msrb.mxu2 %vm73_vm0, %v952_v5  ;;  %3683 = vmatpush.msk.msrb.mxu3 %vm73_vm0, %v953_v6  ;;  %v1126_v8 = vpop.permute.xlu2 %1125 }
  0xc7   :  { %3676 = vmatpush.msk.msrb.mxu0 %vm73_vm0, %v770_v7  ;;  %3682 = vmatmul.msk.f32.vlgmr.msrb.gmra.mxu2 %vm69_vm2, %v3680_v2  ;;  %v1139_v25 = vsel %vm1137_vm7, %v1126_v8, %v1128_v3 }
  0xc8   :  { %3677 = vmatmul.msk.f32.vlgmr.msrb.gmra.mxu0 %vm69_vm2, %v3667_v57  ;;  %3684 = vmatmul.msk.f32.vlgmr.msrb.gmra.mxu3 %vm69_vm2, %v3680_v2 }
  0xcc   :  { %v764_v9 = vpop.permute.xlu0 %763 }
  0xcd   :  { %v946_v10 = vpop.permute.xlu1 %945  ;;  %v771_v11 = vsel %vm765_vm5, %v762_v4, %v764_v9 }
  0xce   :  { %v956_v18 = vsel %vm951_vm6, %v946_v10, %v948_v59  ;;  %3678 = vmatpush.msk.msrb.mxu1 %vm73_vm0, %v771_v11  ;;  %v1312_v19 = vpop.permute.xlu2 %1311 }
  0xcf   :  { %3689 = vmatpush.msk.msra.mxu2 %vm73_vm0, %v956_v18  ;;  %3679 = vmatmul.msk.f32.vlgmr.msrb.gmra.mxu1 %vm69_vm2, %v3667_v57 }
  0xd0   :  { %3690 = vmatmul.msk.f32.vlgmr.msra.gmra.mxu2 %vm69_vm2, %v3680_v2 }
  0xd4   :  { %v944_v20 = vpop.permute.xlu0 %943 }
  0xd5   :  { %v950_v21 = vpop.permute.xlu1 %949  ;;  %v954_v22 = vsel %vm951_vm6, %v942_v54, %v944_v20  ;;  %v955_v23 = vsel %vm951_vm6, %v944_v20, %v946_v10 }
  0xd6   :  { %v957_v24 = vsel %vm951_vm6, %v948_v59, %v950_v21  ;;  %3685 = vmatpush.msk.msra.mxu0 %vm73_vm0, %v954_v22  ;;  %3687 = vmatpush.msk.msra.mxu1 %vm73_vm0, %v955_v23  ;;  %v1136_v28 = vpop.permute.xlu2 %1135 }
  0xd7   :  { %3691 = vmatpush.msk.msra.mxu3 %vm73_vm0, %v957_v24  ;;  %3686 = vmatmul.msk.f32.vlgmr.msra.gmra.mxu0 %vm69_vm2, %v3680_v2 }
  0xd8   :  { %3688 = vmatmul.msk.f32.vlgmr.msra.gmra.mxu1 %vm69_vm2, %v3680_v2  ;;  %3692 = vmatmul.msk.f32.vlgmr.msra.gmra.mxu3 %vm69_vm2, %v3680_v2 }
  0xd9   :  { %3696 = vmatpush.msk.msrb.mxu1 %vm73_vm0, %v1139_v25 }
  0xdc   :  { %v1130_v26 = vpop.permute.xlu0 %1129 }
  0xdd   :  { %v1140_v14 = vsel %vm1137_vm7, %v1128_v3, %v1130_v26  ;;  %v1124_v15 = vpop.permute.xlu1 %1123 }
  0xde   :  { %v1138_v16 = vsel %vm1137_vm7, %v1124_v15, %v1126_v8  ;;  %3698 = vmatpush.msk.msrb.mxu2 %vm73_vm0, %v1140_v14  ;;  %v1316_v31 = vpop.permute.xlu2 %1315 }
  0xdf   :  { %3694 = vmatpush.msk.msrb.mxu0 %vm73_vm0, %v1138_v16  ;;  %3699 = vmatmul.msk.f32.vlgmr.msrb.gmra.mxu2 %vm69_vm2, %v3693_v27 }
  0xe0   :  { %3695 = vmatmul.msk.f32.vlgmr.msrb.gmra.mxu0 %vm69_vm2, %v3693_v27  ;;  %3697 = vmatmul.msk.f32.vlgmr.msrb.gmra.mxu1 %vm69_vm2, %v3693_v27 }
  0xe4   :  { %v1132_v17 = vpop.permute.xlu0 %1131 }
  0xe5   :  { %v1141_v29 = vsel %vm1137_vm7, %v1130_v26, %v1132_v17  ;;  %v1310_v12 = vpop.permute.xlu1 %1309 }
  0xe6   :  { %v1324_v30 = vsel %vm1323_vm8, %v1310_v12, %v1312_v19  ;;  %3700 = vmatpush.msk.msrb.mxu3 %vm73_vm0, %v1141_v29 }
  0xe7   :  { %3707 = vmatpush.msk.msra.mxu2 %vm73_vm0, %v1324_v30  ;;  %3701 = vmatmul.msk.f32.vlgmr.msrb.gmra.mxu3 %vm69_vm2, %v3693_v27  ;;  %v1502_v38 = vpop.permute.xlu2 %1501 }
  0xe8   :  { %3708 = vmatmul.msk.f32.vlgmr.msra.gmra.mxu2 %vm69_vm2, %v3706_v13 }
  0xec   :  { %v1134_v32 = vpop.permute.xlu0 %1133 }
  0xed   :  { %v1142_v33 = vsel %vm1137_vm7, %v1132_v17, %v1134_v32  ;;  %v1143_v34 = vsel %vm1137_vm7, %v1134_v32, %v1136_v28  ;;  %v1314_v35 = vpop.permute.xlu1 %1313 }
  0xee   :  { %v1325_v36 = vsel %vm1323_vm8, %v1312_v19, %v1314_v35  ;;  %v1326_v37 = vsel %vm1323_vm8, %v1314_v35, %v1316_v31  ;;  %3702 = vmatpush.msk.msra.mxu0 %vm73_vm0, %v1142_v33  ;;  %3704 = vmatpush.msk.msra.mxu1 %vm73_vm0, %v1143_v34 }
  0xef   :  { %3709 = vmatpush.msk.msra.mxu3 %vm73_vm0, %v1325_v36  ;;  %3703 = vmatmul.msk.f32.vlgmr.msra.gmra.mxu0 %vm69_vm2, %v3693_v27  ;;  %v1504_v43 = vpop.permute.xlu2 %1503 }
  0xf0   :  { %3705 = vmatmul.msk.f32.vlgmr.msra.gmra.mxu1 %vm69_vm2, %v3693_v27  ;;  %3710 = vmatmul.msk.f32.vlgmr.msra.gmra.mxu3 %vm69_vm2, %v3706_v13  ;;  %v1513_v46 = vsel %vm1509_vm9, %v1502_v38, %v1504_v43 }
  0xf1   :  { %3711 = vmatpush.msk.msrb.mxu0 %vm73_vm0, %v1326_v37 }
  0xf4   :  { %v1318_v39 = vpop.permute.xlu0 %1317 }
  0xf5   :  { %v1327_v40 = vsel %vm1323_vm8, %v1316_v31, %v1318_v39  ;;  %v1320_v41 = vpop.permute.xlu1 %1319 }
  0xf6   :  { %v1328_v42 = vsel %vm1323_vm8, %v1318_v39, %v1320_v41  ;;  %3713 = vmatpush.msk.msrb.mxu1 %vm73_vm0, %v1327_v40 }
  0xf7   :  { %3715 = vmatpush.msk.msrb.mxu2 %vm73_vm0, %v1328_v42  ;;  %3712 = vmatmul.msk.f32.vlgmr.msrb.gmra.mxu0 %vm69_vm2, %v3706_v13 }
  0xf8   :  { %3714 = vmatmul.msk.f32.vlgmr.msrb.gmra.mxu1 %vm69_vm2, %v3706_v13  ;;  %3716 = vmatmul.msk.f32.vlgmr.msrb.gmra.mxu2 %vm69_vm2, %v3706_v13 }
  0xfc   :  { %v1322_v44 = vpop.permute.xlu0 %1321 }
  0xfd   :  { %v1329_v45 = vsel %vm1323_vm8, %v1320_v41, %v1322_v44  ;;  %v1500_v47 = vpop.permute.xlu1 %1499 }
  0xfe   :  { %v1512_v49 = vsel %vm1509_vm9, %v1500_v47, %v1502_v38  ;;  %3717 = vmatpush.msk.msrb.mxu3 %vm73_vm0, %v1329_v45 }
  0xff   :  { %3724 = vmatpush.msk.msra.mxu2 %vm73_vm0, %v1512_v49  ;;  %3718 = vmatmul.msk.f32.vlgmr.msrb.gmra.mxu3 %vm69_vm2, %v3706_v13 }
 0x100   :  { %3725 = vmatmul.msk.f32.vlgmr.msra.gmra.mxu2 %vm69_vm2, %v3719_v48  ;;  %3726 = vmatpush.msk.msra.mxu3 %vm73_vm0, %v1513_v46 }
 0x105   :  { %v1498_v50 = vpop.permute.xlu1 %1497  ;;  %v103_v60 = vpop.f32.mrf.mxu0 }
 0x106   :  { %v1511_v51 = vsel %vm1509_vm9, %v1498_v50, %v1500_v47  ;;  %v1496_v52 = vpop.permute.xlu0 %1495 }
 0x107   :  { %v1510_v53 = vsel %vm1509_vm9, %v1496_v52, %v1498_v50  ;;  %3722 = vmatpush.msk.msra.mxu1 %vm73_vm0, %v1511_v51  ;;  %3727 = vmatmul.msk.f32.vlgmr.msra.gmra.mxu3 %vm69_vm2, %v3719_v48  ;;  %v123_v59 = vpop.f32.mrf.mxu1 }
 0x108   :  { %3720 = vmatpush.msk.msra.mxu0 %vm73_vm0, %v1510_v53  ;;  %3723 = vmatmul.msk.f32.vlgmr.msra.gmra.mxu1 %vm69_vm2, %v3719_v48 }
 0x109   :  { %3721 = vmatmul.msk.f32.vlgmr.msra.gmra.mxu0 %vm69_vm2, %v3719_v48 }
 0x10b   :  { %v143_v58 = vpop.f32.mrf.mxu2 }
 0x10c   :  { %v163_v61 = vpop.f32.mrf.mxu3 }
 0x10d   :  { %v1508_v54 = vpop.permute.xlu1 %1507  ;;  %v183_v0 = vpop.f32.mrf.mxu0 }
 0x10e   :  { %v1506_v55 = vpop.permute.xlu0 %1505 }
 0x10f   :  { %v1514_v56 = vsel %vm1509_vm9, %v1504_v43, %v1506_v55  ;;  %v1515_v57 = vsel %vm1509_vm9, %v1506_v55, %v1508_v54 }
 0x110   :  { %3728 = vmatpush.msk.msrb.mxu0 %vm73_vm0, %v1514_v56  ;;  %3730 = vmatpush.msk.msrb.mxu1 %vm73_vm0, %v1515_v57  ;;  %v203_v63 = vpop.f32.mrf.mxu1 }
 0x111   :  { %3729 = vmatmul.msk.f32.vlgmr.msrb.gmra.mxu0 %vm69_vm2, %v3719_v48  ;;  %3731 = vmatmul.msk.f32.vlgmr.msrb.gmra.mxu1 %vm69_vm2, %v3719_v48 }
 0x114   :  { %v252_v62 = vpop.f32.mrf.mxu2  ;;  %v272_v3 = vpop.f32.mrf.mxu3 }
 0x115   :  { %v292_v4 = vpop.f32.mrf.mxu0  ;;  %v273_v37 = vadd.f32 %v272_v3, %v123_v59  ;;  %v253_v40 = vadd.f32 %v252_v62, %v103_v60 }
 0x116   :  { %v293_v34 = vadd.f32 %v292_v4, %v143_v58  ;;  %v18_v58 = vld [vmem:[%s4767_s3] sm:$0x3f] }
 0x118   :  { %v312_v2 = vpop.f32.mrf.mxu1 }
 0x119   :  { %v313_v42 = vadd.f32 %v312_v2, %v163_v61 }
 0x11c   :  { %v332_v1 = vpop.f32.mrf.mxu2  ;;  %v352_v5 = vpop.f32.mrf.mxu3 }
 0x11d   :  { %v432_v8 = vpop.f32.mrf.mxu0  ;;  %v353_v47 = vadd.f32 %v352_v5, %v203_v63  ;;  %v333_v50 = vadd.f32 %v332_v1, %v183_v0  ;;  %v4270_v1 = vperm.slane %v18_v58, 2 }
 0x11e   :  { %v535_v45 = vadd.f32 %v432_v8, %v253_v40 }
 0x120   :  { %v452_v7 = vpop.f32.mrf.mxu1 }
 0x121   :  { %v536_v41 = vadd.f32 %v452_v7, %v273_v37 }
 0x124   :  { %v472_v6 = vpop.f32.mrf.mxu2  ;;  %v492_v9 = vpop.f32.mrf.mxu3 }
 0x125   :  { %v512_v18 = vpop.f32.mrf.mxu0  ;;  %v537_v39 = vadd.f32 %v472_v6, %v293_v34  ;;  %v538_v51 = vadd.f32 %v492_v9, %v313_v42 }
 0x126   :  { %v539_v62 = vadd.f32 %v512_v18, %v333_v50 }
 0x128   :  { %v532_v11 = vpop.f32.mrf.mxu1 }
 0x129   :  { %v540_v59 = vadd.f32 %v532_v11, %v353_v47 }
 0x12c   :  { %v618_v10 = vpop.f32.mrf.mxu2  ;;  %v638_v19 = vpop.f32.mrf.mxu3 }
 0x12d   :  { %v658_v22 = vpop.f32.mrf.mxu0  ;;  %v722_v48 = vadd.f32 %v638_v19, %v536_v41  ;;  %v721_v52 = vadd.f32 %v618_v10, %v535_v45 }
 0x12e   :  { %v723_v43 = vadd.f32 %v658_v22, %v537_v39  ;;  %v4274_v22 = vperm.slane %v18_v58, 1 }
 0x130   :  { %v678_v21 = vpop.f32.mrf.mxu1 }
 0x131   :  { %v724_v3 = vadd.f32 %v678_v21, %v538_v51  ;;  %v4276_v21 = vperm.slane %v18_v58, 0 }
 0x134   :  { %v698_v20 = vpop.f32.mrf.mxu2  ;;  %v718_v23 = vpop.f32.mrf.mxu3 }
 0x135   :  { %v725_v5 = vadd.f32 %v698_v20, %v539_v62  ;;  %v726_v9 = vadd.f32 %v718_v23, %v540_v59 }
 0x13c   :  { %v844_v24 = vpop.f32.mrf.mxu2  ;;  %v804_v26 = vpop.f32.mrf.mxu0 }
 0x13d   :  { %v824_v25 = vpop.f32.mrf.mxu1  ;;  %v909_v49 = vadd.f32 %v844_v24, %v723_v43  ;;  %v907_v57 = vadd.f32 %v804_v26, %v721_v52 }
 0x13e   :  { %v908_v54 = vadd.f32 %v824_v25, %v722_v48 }
 0x143   :  { %v864_v27 = vpop.f32.mrf.mxu3 }
 0x144   :  { %v910_v6 = vadd.f32 %v864_v27, %v724_v3 }
 0x145   :  { %v884_v15 = vpop.f32.mrf.mxu0 }
 0x146   :  { %v911_v11 = vadd.f32 %v884_v15, %v725_v5 }
 0x14a   :  { %v990_v28 = vpop.f32.mrf.mxu2 }
 0x14b   :  { %v1010_v16 = vpop.f32.mrf.mxu3  ;;  %v1093_v63 = vadd.f32 %v990_v28, %v907_v57 }
 0x14c   :  { %v904_v14 = vpop.f32.mrf.mxu1  ;;  %v1094_v60 = vadd.f32 %v1010_v16, %v908_v54 }
 0x14d   :  { %v912_v26 = vadd.f32 %v904_v14, %v726_v9  ;;  %v4288_v14 = vperm.slane %v18_v58, 3 }
 0x153   :  { %v1070_v17 = vpop.f32.mrf.mxu2 }
 0x154   :  { %v1030_v12 = vpop.f32.mrf.mxu0  ;;  %v1097_v16 = vadd.f32 %v1070_v17, %v911_v11 }
 0x155   :  { %v1050_v29 = vpop.f32.mrf.mxu1  ;;  %v1095_v55 = vadd.f32 %v1030_v12, %v909_v49 }
 0x156   :  { %v1096_v24 = vadd.f32 %v1050_v29, %v910_v6 }
 0x15b   :  { %v1090_v13 = vpop.f32.mrf.mxu3 }
 0x15d   :  { %v1196_v31 = vpop.f32.mrf.mxu1  ;;  %v1176_v32 = vpop.f32.mrf.mxu0 }
 0x15e   :  { %v1280_v2 = vadd.f32 %v1196_v31, %v1094_v60  ;;  %v1279_v7 = vadd.f32 %v1176_v32, %v1093_v63 }
 0x162   :  { %v1216_v30 = vpop.f32.mrf.mxu2 }
 0x163   :  { %v1281_v61 = vadd.f32 %v1216_v30, %v1095_v55  ;;  %v1098_v30 = vadd.f32 %v1090_v13, %v912_v26 }
 0x16a   :  { %v1236_v33 = vpop.f32.mrf.mxu3 }
 0x16b   :  { %v1362_v35 = vpop.f32.mrf.mxu2  ;;  %v1282_v23 = vadd.f32 %v1236_v33, %v1096_v24 }
 0x16c   :  { %v1256_v38 = vpop.f32.mrf.mxu0  ;;  %v1465_v18 = vadd.f32 %v1362_v35, %v1279_v7 }
 0x16d   :  { %v1276_v36 = vpop.f32.mrf.mxu1  ;;  %v1283_v29 = vadd.f32 %v1256_v38, %v1097_v16  ;;  %v4297_v38 = vperm.slane %v18_v58, 4 }
 0x16e   :  { %v1284_v34 = vadd.f32 %v1276_v36, %v1098_v30  ;;  %v4300_v36 = vperm.slane %v18_v58, 5 }
 0x173   :  { %v1382_v44 = vpop.f32.mrf.mxu3 }
 0x174   :  { %v1402_v56 = vpop.f32.mrf.mxu0  ;;  %v1466_v10 = vadd.f32 %v1382_v44, %v1280_v2 }
 0x175   :  { %v1422_v53 = vpop.f32.mrf.mxu1  ;;  %v1467_v4 = vadd.f32 %v1402_v56, %v1281_v61 }
 0x176   :  { %v1468_v31 = vadd.f32 %v1422_v53, %v1282_v23 }
 0x17b   :  { %v1442_v46 = vpop.f32.mrf.mxu2 }
 0x17c   :  { %v1469_v41 = vadd.f32 %v1442_v46, %v1283_v29 }
 0x182   :  { %v1462_v0 = vpop.f32.mrf.mxu3 }
 0x183   :  { %v1588_v8 = vpop.f32.mrf.mxu2  ;;  %v1470_v44 = vadd.f32 %v1462_v0, %v1284_v34 }
 0x184   :  { %v4272_v19 = vadd.f32 %v1588_v8, %v1467_v4 }
 0x185   :  { %v1568_v25 = vpop.f32.mrf.mxu1 }
 0x186   :  { %v1672_v28 = vmul.f32 %v4270_v1, %v4272_v19  ;;  %v1548_v20 = vpop.f32.mrf.mxu0  ;;  %v4280_v27 = vadd.f32 %v1568_v25, %v1466_v10  ;;  %v3908_v10 = vmov 0  }
 0x187   :  { %v4282_v12 = vadd.f32 %v1548_v20, %v1465_v18  ;;  %3864 = vset.pattern.permute.xlu1 %v3908_v10 }
 0x188   :  { %v1671_v15 = vmul.f32 %v4274_v22, %v4280_v27  ;;  %v1691_v35 = vmul.f32 %v1672_v28, %v4272_v19  ;;  %v1679_v45 = vsel %vm73_vm0, %v1672_v28, 0.0 }
 0x189   :  { %v1670_v32 = vmul.f32 %v4276_v21, %v4282_v12 }
 0x18a   :  { %v1677_v37 = vsel %vm73_vm0, %v1671_v15, 0.0  ;;  %v1690_v17 = vmul.f32 %v1671_v15, %v4280_v27  ;;  %v1608_v33 = vpop.f32.mrf.mxu3  ;;  %v1698_v49 = vsel %vm73_vm0, %v1691_v35, 0.0 }
 0x18b   :  { %v1676_v13 = vsel %vm73_vm0, %v1670_v32, 0.0  ;;  %v1689_v39 = vmul.f32 %v1670_v32, %v4282_v12  ;;  %v4295_v40 = vadd.f32 %v1608_v33, %v1468_v31  ;;  %v19_v32 = vld [vmem:[%s4766_s2] sm:$0xf] }
 0x18c   :  { %v1678_v42 = vadd.f32 %v1677_v37, %v1676_v13  ;;  %v1696_v43 = vsel %vm73_vm0, %v1690_v17, 0.0  ;;  %v3909_v17 = vmov 1   ;;  %v3910_v13 = vmov 0.0  }
 0x18d   :  { %v1695_v47 = vsel %vm73_vm0, %v1689_v39, 0.0  ;;  %v1673_v48 = vmul.f32 %v4288_v14, %v4295_v40  ;;  %1772 = vst.msk [vmem:[#allocation2] sm:$0xf] %vm1771_vm13, %v3910_v13 }
 0x18e   :  { %v1697_v50 = vadd.f32 %v1696_v43, %v1695_v47  ;;  %v1628_v51 = vpop.f32.mrf.mxu0  ;;  %v1648_v52 = vpop.f32.mrf.mxu1  ;;  %v1680_v53 = vadd.f32 %v1679_v45, %v1678_v42  ;;  %1774 = vst.msk [vmem:[#allocation2 + $0x18] sm:$0xf] %vm1773_vm14, %v3910_v13 }
 0x18f   :  { %v1692_v46 = vmul.f32 %v1673_v48, %v4295_v40  ;;  %v4308_v54 = vadd.f32 %v1628_v51, %v1469_v41  ;;  %v4310_v55 = vadd.f32 %v1648_v52, %v1470_v44  ;;  %v1681_v56 = vsel %vm73_vm0, %v1673_v48, 0.0 }
 0x190   :  { %v1682_v57 = vadd.f32 %v1681_v56, %v1680_v53  ;;  %v1699_v58 = vadd.f32 %v1698_v49, %v1697_v50 }
 0x191   :  { %v1674_v59 = vmul.f32 %v4297_v38, %v4308_v54  ;;  %v1675_v60 = vmul.f32 %v4300_v36, %v4310_v55  ;;  %v1700_v61 = vsel %vm73_vm0, %v1692_v46, 0.0 }
 0x192   :  { %v1701_v62 = vadd.f32 %v1700_v61, %v1699_v58 }
 0x193   :  { %v1693_v3 = vmul.f32 %v1674_v59, %v4308_v54  ;;  %v1683_v63 = vsel %vm73_vm0, %v1674_v59, 0.0  ;;  %v1694_v2 = vmul.f32 %v1675_v60, %v4310_v55  ;;  %v1685_v0 = vsel %vm73_vm0, %v1675_v60, 0.0 }
 0x194   :  { %v1684_v4 = vadd.f32 %v1683_v63, %v1682_v57 }
 0x195   :  { %v1702_v5 = vsel %vm73_vm0, %v1693_v3, 0.0  ;;  %v1704_v8 = vsel %vm73_vm0, %v1694_v2, 0.0 }
 0x196   :  { %v1686_v6 = vadd.f32 %v1685_v0, %v1684_v4  ;;  %v1703_v7 = vadd.f32 %v1702_v5, %v1701_v62 }
 0x198   :  { %1687 = vadd.xlane.f32.xlu2 %v1686_v6  ;;  %v1705_v9 = vadd.f32 %v1704_v8, %v1703_v7 }
 0x19a   :  { %1706 = vadd.xlane.f32.xlu0 %v1705_v9 }
 0x20b   :  { %v1688_v11 = vpop.xlane.xlu2 %1687 }
 0x20c   :  { %v4324_v24 = vmul.f32 0.001953125, %v1688_v11 }
 0x20d   :  { %v1707_v18 = vpop.xlane.xlu0 %1706 }
 0x20e   :  { %v1709_v25 = vmul.f32 0.001953125, %v1707_v18  ;;  %v1710_v26 = vmul.f32 %v4324_v24, %v4324_v24  ;;  %v1725_v39 = vsub.f32 %v4282_v12, %v4324_v24  ;;  %v1726_v41 = vsub.f32 %v4280_v27, %v4324_v24 }
 0x20f   :  { %v1728_v42 = vsub.f32 %v4295_v40, %v4324_v24  ;;  %v1727_v47 = vsub.f32 %v4272_v19, %v4324_v24  ;;  %v1730_v12 = vsub.f32 %v4310_v55, %v4324_v24  ;;  %v1729_v55 = vsub.f32 %v4308_v54, %v4324_v24 }
 0x210   :  { %v1711_v28 = vsub.f32 %v1709_v25, %v1710_v26 }
 0x212   :  { %v1712_v20 = vmax.f32 %v1711_v28, 0.0 }
 0x214   :  { %v1713_v16 = vadd.f32 1e-05, %v1712_v20 }
 0x216   :  { %3869 = vrsqrt.f32 %v1713_v16  ;;  %vm1720_vm11 = vweird.f32 %v1713_v16 }
 0x21c   :  { %v3870_v23 = vpop.eup %3869 }
 0x21d   :  { %v1715_v30 = vmul.f32 %v3870_v23, %v1713_v16  ;;  %vm1721_vm10 = vweird.f32 %v3870_v23 }
 0x21e   :  { %vm1722_vm12 = vmor %vm1720_vm11, %vm1721_vm10 }
 0x21f   :  { %v1716_v15 = vmul.f32 %v3870_v23, %v1715_v30 }
 0x221   :  { %v1717_v29 = vmul.f32 0.5, %v1716_v15 }
 0x223   :  { %v1718_v31 = vsub.f32 1.5, %v1717_v29 }
 0x225   :  { %v1719_v34 = vmul.f32 %v3870_v23, %v1718_v31 }
 0x227   :  { %v1723_v35 = vsel %vm1722_vm12, %v3870_v23, %v1719_v34 }
 0x228   :  { %v1724_v37 = vmul.f32 %v1723_v35, %v19_v32 }
 0x22a   :  { %1733 = vperm.xlu1 %3864, %v1724_v37  }
 0x232   :  { %3865 = vset.pattern.permute.xlu1 %v3909_v17 }
 0x233   :  { %1744 = vperm.xlu1 %3865, %v19_v32  }
 0x29c   :  { %v1734_v33 = vpop.permute.xlu1 %1733 }
 0x29d   :  { %v1736_v43 = vmul.f32 %v1734_v33, %v1725_v39  ;;  %v1737_v44 = vmul.f32 %v1734_v33, %v1726_v41  ;;  %v1739_v45 = vmul.f32 %v1734_v33, %v1728_v42  ;;  %v1738_v52 = vmul.f32 %v1734_v33, %v1727_v47 }
 0x29e   :  { %v1741_v46 = vmul.f32 %v1734_v33, %v1730_v12  ;;  %v1740_v4 = vmul.f32 %v1734_v33, %v1729_v55 }
 0x2a5   :  { %v1745_v48 = vpop.permute.xlu1 %1744 }
 0x2a6   :  { %v1748_v49 = vadd.f32 %v1745_v48, %v1737_v44  ;;  %v1750_v50 = vadd.f32 %v1745_v48, %v1739_v45  ;;  %v1747_v51 = vadd.f32 %v1745_v48, %v1736_v43  ;;  %v1749_v58 = vadd.f32 %v1745_v48, %v1738_v52 }
 0x2a7   :  { %v1752_v59 = vadd.f32 %v1745_v48, %v1741_v46  ;;  %v1751_v6 = vadd.f32 %v1745_v48, %v1740_v4 }
 0x2a8   :  { %vm1753_vm15 = vcmp.gt.f32.partialorder %v1747_v51, 0.0  ;;  %vm1754_vm10 = vcmp.gt.f32.partialorder %v1748_v49, 0.0  ;;  %v1759_v27 = vmul.f32 0.2, %v1747_v51  ;;  %v1760_v40 = vmul.f32 0.2, %v1748_v49 }
 0x2a9   :  { %vm1756_vm11 = vcmp.gt.f32.partialorder %v1750_v50, 0.0  ;;  %v1762_v53 = vmul.f32 0.2, %v1750_v50  ;;  %v1761_v3 = vmul.f32 0.2, %v1749_v58  ;;  %vm1755_vm12 = vcmp.gt.f32.partialorder %v1749_v58, 0.0 }
 0x2aa   :  { %v1765_v56 = vsel %vm1753_vm15, %v1747_v51, %v1759_v27  ;;  %v1766_v57 = vsel %vm1754_vm10, %v1748_v49, %v1760_v40  ;;  %v1764_v0 = vmul.f32 0.2, %v1752_v59  ;;  %vm1758_vm15 = vcmp.gt.f32.partialorder %v1752_v59, 0.0 }
 0x2ab   :  { %v1776_v19 = vmul.f32 %v1766_v57, %v4274_v22  ;;  %v1768_v60 = vsel %vm1756_vm11, %v1750_v50, %v1762_v53  ;;  %v1775_v61 = vmul.f32 %v1765_v56, %v4276_v21  ;;  %v1767_v5 = vsel %vm1755_vm12, %v1749_v58, %v1761_v3 }
 0x2ac   :  { %v1778_v2 = vmul.f32 %v1768_v60, %v4288_v14  ;;  %v1770_v8 = vsel %vm1758_vm15, %v1752_v59, %v1764_v0  ;;  %v1777_v9 = vmul.f32 %v1767_v5, %v4270_v1  ;;  %v1763_v10 = vmul.f32 0.2, %v1751_v6 }
 0x2ad   :  { %v1787_v62 = vrot.slane %v1776_v19, 4  ;;  %vm1757_vm10 = vcmp.gt.f32.partialorder %v1751_v6, 0.0  ;;  %v1780_v11 = vmul.f32 %v1770_v8, %v4300_v36  ;;  %vm1812_vm11 = vcmask 1047556  }
 0x2ae   :  { %v1788_v7 = vrot.slane %v1778_v2, 4  ;;  %v1769_v24 = vsel %vm1757_vm10, %v1751_v6, %v1763_v10  ;;  %vm1802_vm12 = vcmask 154624   ;;  %vm1813_vm15 = vmor %vm1812_vm11, %vm1773_vm14 }
 0x2af   :  { %v1790_v63 = vsel %vm73_vm0, %v1775_v61, %v1787_v62  ;;  %v1789_v18 = vrot.slane %v1780_v11, 4  ;;  %v1779_v25 = vmul.f32 %v1769_v24, %v4297_v38 }
 0x2b0   :  { %1793 = vrot.lane.b32.xlu1 %v1790_v63, %s3911_s22  ;;  %v1791_v54 = vsel %vm73_vm0, %v1777_v9, %v1788_v7 }
 0x2b1   :  { %v1792_v26 = vsel %vm73_vm0, %v1779_v25, %v1789_v18 }
 0x2b8   :  { %1795 = vrot.lane.b32.xlu1 %v1791_v54, %s3911_s22 }
 0x2c0   :  { %1797 = vrot.lane.b32.xlu1 %v1792_v26, %s3911_s22 }
 0x322   :  { %v1794_v28 = vpop.permute.xlu1 %1793 }
 0x323   :  { %v1799_v20 = vrot.slane %v1794_v28, 4 }
 0x325   :  { %v1803_v16 = vsel %vm1802_vm12, %v1799_v20, %v1794_v28 }
 0x326   :  { %1814 = vst.msk [vmem:[#allocation2] sm:$0xff] %vm1813_vm15, %v1803_v16 }
 0x32a   :  { %v1796_v23 = vpop.permute.xlu1 %1795 }
 0x32b   :  { %v1800_v30 = vrot.slane %v1796_v23, 4 }
 0x32d   :  { %v4356_v15 = vld [vmem:[#allocation2] sm:$0xff]  ;;  %v1804_v29 = vsel %vm73_vm0, %v1799_v20, %v1800_v30 }
 0x32e   :  { %1833 = vst [vmem:[#allocation1] ss:$2 sm:$0xff] %v4356_v15  ;;  %v4361_v31 = vsel %vm1802_vm12, %v1804_v29, %v1796_v23 }
 0x32f   :  { %1835 = vst [vmem:[#allocation1 + $0x10] ss:$2 sm:$0xff] %v4361_v31 }
 0x332   :  { %v1798_v32 = vpop.permute.xlu1 %1797 }
 0x333   :  { %v1801_v34 = vrot.slane %v1798_v32, 4 }
 0x335   :  { %v1806_v35 = vsel %vm73_vm0, %v1800_v30, %v1801_v34  ;;  %1817 = vst.msk [vmem:[#allocation2 + $0x18] sm:$0xf] %vm1771_vm13, %v1801_v34  ;;  %v1841_v37 = vld.sshfl [vmem:[#allocation1 + $0x8] sm:$0xff pattern:$0x75316420] }
 0x336   :  { %v4367_v17 = vsel %vm1802_vm12, %v1806_v35, %v1798_v32  ;;  %1849 = vrot.lane.b32.xlu1 %v1841_v37, %s3900_s23  ;;  %v1840_v33 = vld.sshfl [vmem:[#allocation1] sm:$0xff pattern:$0x75316420]  ;;  %v1843_v13 = vld.sshfl [vmem:[#allocation1 + $0x18] sm:$0xff pattern:$0x75316420] }
 0x337   :  { %1847 = vrot.lane.b32.xlu2 %v1840_v33, %s3900_s23  ;;  %1837 = vst [vmem:[#allocation1 + $0x20] ss:$2 sm:$0xff] %v4367_v17  ;;  %v1842_v39 = vld.sshfl [vmem:[#allocation1 + $0x10] sm:$0xff pattern:$0x75316420] }
 0x338   :  { %2005 = vst [vmem:[#allocation1] ss:$2 sm:$0xff] %v4356_v15 }
 0x339   :  { %2007 = vst [vmem:[#allocation1 + $0x10] ss:$2 sm:$0xff] %v4361_v31 }
 0x33c   :  { %v1828_v41 = vld [vmem:[#allocation2 + $0x18] sm:$0xf] }
 0x33d   :  { %1839 = vst [vmem:[#allocation1 + $0x30] ss:$2 sm:$0xff] %v1828_v41  ;;  %v2156_v49 = vld [vmem:[#allocation2 + $0x18] sm:$0xf] }
 0x33e   :  { %v1844_v42 = vld.sshfl [vmem:[#allocation1 + $0x20] sm:$0xff pattern:$0x75316420]  ;;  %v1845_v43 = vld.sshfl [vmem:[#allocation1 + $0x28] sm:$0xff pattern:$0x75316420] }
 0x33f   :  { %1853 = vrot.lane.b32.xlu2 %v1843_v13, %s3900_s23  ;;  %v4375_v44 = vld.sshfl [vmem:[#allocation1] sm:$0xff pattern:$0x75316420]  ;;  %v4377_v45 = vld.sshfl [vmem:[#allocation1 + $0x8] sm:$0xff pattern:$0x75316420]  ;;  %1855 = vrot.lane.b32.xlu1 %v1844_v42, %s3900_s23 }
 0x340   :  { %2161 = vst [vmem:[#allocation1] ss:$2 sm:$0xff] %v4356_v15  ;;  %v4381_v47 = vld.sshfl [vmem:[#allocation1 + $0x10] sm:$0xff pattern:$0x75316420] }
 0x341   :  { %v4383_v48 = vld.sshfl [vmem:[#allocation1 + $0x18] sm:$0xff pattern:$0x75316420]  ;;  %2009 = vst [vmem:[#allocation1 + $0x20] ss:$2 sm:$0xff] %v4367_v17 }
 0x342   :  { %2163 = vst [vmem:[#allocation1 + $0x10] ss:$2 sm:$0xff] %v4361_v31  ;;  %v2341_v46 = vld [vmem:[#allocation2 + $0x18] sm:$0xf] }
 0x343   :  { %v2526_v59 = vld [vmem:[#allocation2 + $0x18] sm:$0xf] }
 0x344   :  { %v1846_v50 = vld.sshfl [vmem:[#allocation1 + $0x30] sm:$0xff pattern:$0x75316420]  ;;  %v2711_v2 = vld [vmem:[#allocation2 + $0x18] sm:$0xf] }
 0x345   :  { %1859 = vrot.lane.b32.xlu0 %v1846_v50, %s3900_s23  ;;  %2167 = vst [vmem:[#allocation1 + $0x30] ss:$2 sm:$0xff] %v2156_v49  ;;  %v2896_v11 = vld [vmem:[#allocation2 + $0x18] sm:$0xf] }
 0x346   :  { %v3081_v23 = vld [vmem:[#allocation2 + $0x18] sm:$0xf] }
 0x347   :  { %1857 = vrot.lane.b32.xlu1 %v1845_v43, %s3900_s23  ;;  %v2169_v51 = vld.sshfl [vmem:[#allocation1 + $0x8] sm:$0xff pattern:$0x75316420]  ;;  %v2168_v12 = vld.sshfl [vmem:[#allocation1] sm:$0xff pattern:$0x75316420] }
 0x348   :  { %v4389_v52 = vld.sshfl [vmem:[#allocation1 + $0x20] sm:$0xff pattern:$0x75316420]  ;;  %v4391_v27 = vld.sshfl [vmem:[#allocation1 + $0x28] sm:$0xff pattern:$0x75316420] }
 0x349   :  { %2165 = vst [vmem:[#allocation1 + $0x20] ss:$2 sm:$0xff] %v4367_v17  ;;  %v2170_v40 = vld.sshfl [vmem:[#allocation1 + $0x10] sm:$0xff pattern:$0x75316420] }
 0x34a   :  { %v2171_v53 = vld.sshfl [vmem:[#allocation1 + $0x18] sm:$0xff pattern:$0x75316420]  ;;  %2346 = vst [vmem:[#allocation1] ss:$2 sm:$0xff] %v4356_v15 }
 0x34b   :  { %2348 = vst [vmem:[#allocation1 + $0x10] ss:$2 sm:$0xff] %v4361_v31  ;;  %v3266_v13 = vld [vmem:[#allocation2 + $0x18] sm:$0xf] }
 0x34c   :  { %v2174_v56 = vld.sshfl [vmem:[#allocation1 + $0x30] sm:$0xff pattern:$0x75316420] }
 0x34d   :  { %1851 = vrot.lane.b32.xlu0 %v1842_v39, %s3900_s23  ;;  %2352 = vst [vmem:[#allocation1 + $0x30] ss:$2 sm:$0xff] %v2341_v46 }
 0x34f   :  { %2187 = vrot.lane.b32.xlu1 %v2174_v56, %s3901_s26 }
 0x350   :  { %v2173_v57 = vld.sshfl [vmem:[#allocation1 + $0x28] sm:$0xff pattern:$0x75316420]  ;;  %v2172_v58 = vld.sshfl [vmem:[#allocation1 + $0x20] sm:$0xff pattern:$0x75316420] }
 0x351   :  { %2350 = vst [vmem:[#allocation1 + $0x20] ss:$2 sm:$0xff] %v4367_v17  ;;  %v2354_v19 = vld.sshfl [vmem:[#allocation1 + $0x8] sm:$0xff pattern:$0x75316420] }
 0x352   :  { %v2356_v60 = vld.sshfl [vmem:[#allocation1 + $0x18] sm:$0xff pattern:$0x75316420]  ;;  %v2353_v61 = vld.sshfl [vmem:[#allocation1] sm:$0xff pattern:$0x75316420] }
 0x353   :  { %2531 = vst [vmem:[#allocation1] ss:$2 sm:$0xff] %v4356_v15  ;;  %v2355_v62 = vld.sshfl [vmem:[#allocation1 + $0x10] sm:$0xff pattern:$0x75316420] }
 0x354   :  { %v2359_v55 = vld.sshfl [vmem:[#allocation1 + $0x30] sm:$0xff pattern:$0x75316420]  ;;  %2533 = vst [vmem:[#allocation1 + $0x10] ss:$2 sm:$0xff] %v4361_v31 }
 0x355   :  { %2179 = vrot.lane.b32.xlu0 %v2170_v40, %s3901_s26  ;;  %2372 = vrot.lane.b32.xlu2 %v2359_v55, %s3902_s29  ;;  %2537 = vst [vmem:[#allocation1 + $0x30] ss:$2 sm:$0xff] %v2526_v59 }
 0x357   :  { %2175 = vrot.lane.b32.xlu1 %v2168_v12, %s3901_s26 }
 0x358   :  { %v2357_v3 = vld.sshfl [vmem:[#allocation1 + $0x20] sm:$0xff pattern:$0x75316420]  ;;  %v2358_v63 = vld.sshfl [vmem:[#allocation1 + $0x28] sm:$0xff pattern:$0x75316420] }
 0x359   :  { %2535 = vst [vmem:[#allocation1 + $0x20] ss:$2 sm:$0xff] %v4367_v17 }
 0x35a   :  { %v2539_v4 = vld.sshfl [vmem:[#allocation1 + $0x8] sm:$0xff pattern:$0x75316420]  ;;  %v2538_v0 = vld.sshfl [vmem:[#allocation1] sm:$0xff pattern:$0x75316420] }
 0x35b   :  { %2716 = vst [vmem:[#allocation1] ss:$2 sm:$0xff] %v4356_v15  ;;  %v2541_v5 = vld.sshfl [vmem:[#allocation1 + $0x18] sm:$0xff pattern:$0x75316420] }
 0x35c   :  { %v2544_v6 = vld.sshfl [vmem:[#allocation1 + $0x30] sm:$0xff pattern:$0x75316420] }
 0x35d   :  { %v2540_v7 = vld.sshfl [vmem:[#allocation1 + $0x10] sm:$0xff pattern:$0x75316420]  ;;  %2181 = vrot.lane.b32.xlu0 %v2171_v53, %s3901_s26  ;;  %2177 = vrot.lane.b32.xlu2 %v2169_v51, %s3901_s26  ;;  %2722 = vst [vmem:[#allocation1 + $0x30] ss:$2 sm:$0xff] %v2711_v2 }
 0x35e   :  { %2718 = vst [vmem:[#allocation1 + $0x10] ss:$2 sm:$0xff] %v4361_v31  ;;  %v3733_v51 = vld [vmem:[%s4765_s1 + $0x28] sm:$0xf] }
 0x35f   :  { %2183 = vrot.lane.b32.xlu1 %v2172_v58, %s3901_s26 }
 0x360   :  { %v2542_v8 = vld.sshfl [vmem:[#allocation1 + $0x20] sm:$0xff pattern:$0x75316420]  ;;  %v2543_v9 = vld.sshfl [vmem:[#allocation1 + $0x28] sm:$0xff pattern:$0x75316420] }
 0x361   :  { %2720 = vst [vmem:[#allocation1 + $0x20] ss:$2 sm:$0xff] %v4367_v17 }
 0x362   :  { %v2724_v10 = vld.sshfl [vmem:[#allocation1 + $0x8] sm:$0xff pattern:$0x75316420]  ;;  %v2723_v54 = vld.sshfl [vmem:[#allocation1] sm:$0xff pattern:$0x75316420] }
 0x363   :  { %2901 = vst [vmem:[#allocation1] ss:$2 sm:$0xff] %v4356_v15 }
 0x364   :  { %v2729_v24 = vld.sshfl [vmem:[#allocation1 + $0x30] sm:$0xff pattern:$0x75316420] }
 0x365   :  { %2557 = vrot.lane.b32.xlu0 %v2544_v6, %s3903_s8  ;;  %2185 = vrot.lane.b32.xlu2 %v2173_v57, %s3901_s26  ;;  %2907 = vst [vmem:[#allocation1 + $0x30] ss:$2 sm:$0xff] %v2896_v11  ;;  %v2725_v18 = vld.sshfl [vmem:[#allocation1 + $0x10] sm:$0xff pattern:$0x75316420] }
 0x366   :  { %v2726_v25 = vld.sshfl [vmem:[#allocation1 + $0x18] sm:$0xff pattern:$0x75316420] }
 0x367   :  { %2360 = vrot.lane.b32.xlu1 %v2353_v61, %s3902_s29  ;;  %2903 = vst [vmem:[#allocation1 + $0x10] ss:$2 sm:$0xff] %v4361_v31 }
 0x368   :  { %v2727_v26 = vld.sshfl [vmem:[#allocation1 + $0x20] sm:$0xff pattern:$0x75316420]  ;;  %v2728_v28 = vld.sshfl [vmem:[#allocation1 + $0x28] sm:$0xff pattern:$0x75316420] }
 0x369   :  { %2905 = vst [vmem:[#allocation1 + $0x20] ss:$2 sm:$0xff] %v4367_v17 }
 0x36a   :  { %v2908_v20 = vld.sshfl [vmem:[#allocation1] sm:$0xff pattern:$0x75316420]  ;;  %v2909_v16 = vld.sshfl [vmem:[#allocation1 + $0x8] sm:$0xff pattern:$0x75316420] }
 0x36b   :  { %3086 = vst [vmem:[#allocation1] ss:$2 sm:$0xff] %v4356_v15 }
 0x36c   :  { %v2914_v30 = vld.sshfl [vmem:[#allocation1 + $0x30] sm:$0xff pattern:$0x75316420] }
 0x36d   :  { %2366 = vrot.lane.b32.xlu0 %v2356_v60, %s3902_s29  ;;  %2362 = vrot.lane.b32.xlu2 %v2354_v19, %s3902_s29  ;;  %3092 = vst [vmem:[#allocation1 + $0x30] ss:$2 sm:$0xff] %v3081_v23  ;;  %v3771_v23 = vld [vmem:[%s4765_s1 + $0x30] sm:$0xf] }
 0x36e   :  { %v2910_v29 = vld.sshfl [vmem:[#allocation1 + $0x10] sm:$0xff pattern:$0x75316420]  ;;  %v2911_v32 = vld.sshfl [vmem:[#allocation1 + $0x18] sm:$0xff pattern:$0x75316420] }
 0x36f   :  { %2742 = vrot.lane.b32.xlu1 %v2729_v24, %s3904_s9  ;;  %3088 = vst [vmem:[#allocation1 + $0x10] ss:$2 sm:$0xff] %v4361_v31 }
 0x370   :  { %v2913_v34 = vld.sshfl [vmem:[#allocation1 + $0x28] sm:$0xff pattern:$0x75316420]  ;;  %v2912_v35 = vld.sshfl [vmem:[#allocation1 + $0x20] sm:$0xff pattern:$0x75316420] }
 0x371   :  { %3090 = vst [vmem:[#allocation1 + $0x20] ss:$2 sm:$0xff] %v4367_v17 }
 0x372   :  { %v3094_v37 = vld.sshfl [vmem:[#allocation1 + $0x8] sm:$0xff pattern:$0x75316420]  ;;  %v3093_v33 = vld.sshfl [vmem:[#allocation1] sm:$0xff pattern:$0x75316420] }
 0x373   :  { %3271 = vst [vmem:[#allocation1] ss:$2 sm:$0xff] %v4356_v15 }
 0x374   :  { %v4424_v39 = vld.sshfl [vmem:[#allocation1 + $0x30] sm:$0xff pattern:$0x75316420] }
 0x375   :  { %2364 = vrot.lane.b32.xlu2 %v2355_v62, %s3902_s29  ;;  %2368 = vrot.lane.b32.xlu0 %v2357_v3, %s3902_s29  ;;  %3277 = vst [vmem:[#allocation1 + $0x30] ss:$2 sm:$0xff] %v3266_v13 }
 0x376   :  { %v3095_v41 = vld.sshfl [vmem:[#allocation1 + $0x10] sm:$0xff pattern:$0x75316420]  ;;  %v3096_v42 = vld.sshfl [vmem:[#allocation1 + $0x18] sm:$0xff pattern:$0x75316420] }
 0x377   :  { %2545 = vrot.lane.b32.xlu1 %v2538_v0, %s3903_s8  ;;  %3273 = vst [vmem:[#allocation1 + $0x10] ss:$2 sm:$0xff] %v4361_v31  ;;  %v3758_v0 = vld [vmem:[%s4765_s1 + $0x2c] sm:$0xf] }
 0x378   :  { %v3097_v43 = vld.sshfl [vmem:[#allocation1 + $0x20] sm:$0xff pattern:$0x75316420]  ;;  %v3098_v49 = vld.sshfl [vmem:[#allocation1 + $0x28] sm:$0xff pattern:$0x75316420] }
 0x379   :  { %3275 = vst [vmem:[#allocation1 + $0x20] ss:$2 sm:$0xff] %v4367_v17 }
 0x37a   :  { %v3279_v19 = vld.sshfl [vmem:[#allocation1 + $0x8] sm:$0xff pattern:$0x75316420] }
 0x37d   :  { %2547 = vrot.lane.b32.xlu2 %v2539_v4, %s3903_s8  ;;  %2370 = vrot.lane.b32.xlu0 %v2358_v63, %s3902_s29  ;;  %s3607_s29 = sshll.u32 %s4768_s4, 4  ;;  %s3608_s29 = int_to_ptr.hbm [resolvable:$true] %s3607_s29 }
 0x37e   :  { %v3280_v3 = vld.sshfl [vmem:[#allocation1 + $0x10] sm:$0xff pattern:$0x75316420] }
 0x37f   :  { %2549 = vrot.lane.b32.xlu1 %v2540_v7, %s3903_s8  ;;  %v3284_v7 = vld.sshfl [vmem:[#allocation1 + $0x30] sm:$0xff pattern:$0x75316420] }
 0x380   :  { %v3282_v63 = vld.sshfl [vmem:[#allocation1 + $0x20] sm:$0xff pattern:$0x75316420]  ;;  %v3283_v6 = vld.sshfl [vmem:[#allocation1 + $0x28] sm:$0xff pattern:$0x75316420] }
 0x385   :  { %2551 = vrot.lane.b32.xlu2 %v2541_v5, %s3903_s8  ;;  %2553 = vrot.lane.b32.xlu0 %v2542_v8, %s3903_s8  ;;  %v3281_v5 = vld.sshfl [vmem:[#allocation1 + $0x18] sm:$0xff pattern:$0x75316420] }
 0x387   :  { %2555 = vrot.lane.b32.xlu1 %v2543_v9, %s3903_s8 }
 0x38d   :  { %2927 = vrot.lane.b32.xlu2 %v2914_v30, %s3905_s14  ;;  %2730 = vrot.lane.b32.xlu0 %v2723_v54, %s3904_s9 }
 0x38f   :  { %2732 = vrot.lane.b32.xlu1 %v2724_v10, %s3904_s9 }
 0x391   :  { %v1848_v15 = vpop.permute.xlu2 %1847 }
 0x395   :  { %2736 = vrot.lane.b32.xlu2 %v2726_v25, %s3904_s9  ;;  %2915 = vrot.lane.b32.xlu0 %v2908_v20, %s3905_s14 }
 0x397   :  { %2734 = vrot.lane.b32.xlu1 %v2725_v18, %s3904_s9 }
 0x399   :  { %v1854_v31 = vpop.permute.xlu2 %1853 }
 0x39d   :  { %2919 = vrot.lane.b32.xlu0 %v2910_v29, %s3905_s14  ;;  %2738 = vrot.lane.b32.xlu2 %v2727_v26, %s3904_s9 }
 0x39f   :  { %2917 = vrot.lane.b32.xlu1 %v2909_v16, %s3905_s14 }
 0x3a5   :  { %2740 = vrot.lane.b32.xlu2 %v2728_v28, %s3904_s9  ;;  %2925 = vrot.lane.b32.xlu0 %v2913_v34, %s3905_s14 }
 0x3a7   :  { %2921 = vrot.lane.b32.xlu1 %v2911_v32, %s3905_s14 }
 0x3a8   :  { %v1850_v17 = vpop.permute.xlu1 %1849 }
 0x3a9   :  { %v1861_v50 = vsel %vm62_vm1, %v1848_v15, %v1850_v17 }
 0x3aa   :  { %3734 = vmatpush.msk.msrb.mxu2 %vm73_vm0, %v1861_v50 }
 0x3ab   :  { %3735 = vmatmul.msk.f32.vlgmr.msrb.gmra.mxu2 %vm69_vm2, %v3733_v51 }
 0x3ad   :  { %3102 = vrot.lane.b32.xlu0 %v3094_v37, %s3906_s15  ;;  %2923 = vrot.lane.b32.xlu2 %v2912_v35, %s3905_s14 }
 0x3af   :  { %v4457_v12 = vpop.permute.xlu2 %2372  ;;  %3106 = vrot.lane.b32.xlu1 %v3096_v42, %s3906_s15 }
 0x3b1   :  { %v1856_v40 = vpop.permute.xlu1 %1855 }
 0x3b2   :  { %v1864_v53 = vsel %vm62_vm1, %v1854_v31, %v1856_v40 }
 0x3b3   :  { %3740 = vmatpush.msk.msra.mxu1 %vm73_vm0, %v1864_v53 }
 0x3b4   :  { %3741 = vmatmul.msk.f32.vlgmr.msra.gmra.mxu1 %vm69_vm2, %v3733_v51 }
 0x3b5   :  { %3748 = vmatpush.msk.msrb.mxu1 %vm73_vm0, %v4377_v45  ;;  %3104 = vrot.lane.b32.xlu0 %v3095_v41, %s3906_s15  ;;  %v3278_v45 = vld.sshfl [vmem:[#allocation1] sm:$0xff pattern:$0x75316420] }
 0x3b6   :  { %3100 = vrot.lane.b32.xlu2 %v3093_v33, %s3906_s15 }
 0x3b7   :  { %v1860_v46 = vpop.permute.xlu0 %1859  ;;  %v2178_v56 = vpop.permute.xlu2 %2177  ;;  %3756 = vmatpush.msk.msra.mxu1 %vm73_vm0, %v4391_v27  ;;  %3108 = vrot.lane.b32.xlu1 %v3097_v43, %s3906_s15  ;;  %v3732_v27 = vld [vmem:[%s4765_s1 + $0x24] sm:$0xf] }
 0x3b9   :  { %v1858_v57 = vpop.permute.xlu1 %1857 }
 0x3ba   :  { %v1865_v58 = vsel %vm62_vm1, %v1856_v40, %v1858_v57  ;;  %v1866_v55 = vsel %vm62_vm1, %v1858_v57, %v1860_v46 }
 0x3bb   :  { %3742 = vmatpush.msk.msra.mxu2 %vm73_vm0, %v1865_v58 }
 0x3bc   :  { %3743 = vmatmul.msk.f32.vlgmr.msra.gmra.mxu2 %vm69_vm2, %v3733_v51  ;;  %3749 = vmatmul.msk.f32.vlgmr.msrb.gmra.mxu1 %vm69_vm2, %v3732_v27 }
 0x3bd   :  { %3750 = vmatpush.msk.msrb.mxu2 %vm73_vm0, %v4381_v47  ;;  %3287 = vrot.lane.b32.xlu0 %v3279_v19, %s3907_s20 }
 0x3be   :  { %3285 = vrot.lane.b32.xlu2 %v3278_v45, %s3907_s20 }
 0x3bf   :  { %v1852_v59 = vpop.permute.xlu0 %1851  ;;  %v2186_v60 = vpop.permute.xlu2 %2185  ;;  %3110 = vrot.lane.b32.xlu1 %v3098_v49, %s3906_s15 }
 0x3c0   :  { %v1862_v61 = vsel %vm62_vm1, %v1850_v17, %v1852_v59  ;;  %v1863_v47 = vsel %vm62_vm1, %v1852_v59, %v1854_v31 }
 0x3c1   :  { %3736 = vmatpush.msk.msrb.mxu3 %vm73_vm0, %v1862_v61  ;;  %3738 = vmatpush.msk.msra.mxu0 %vm73_vm0, %v1863_v47  ;;  %v2188_v62 = vpop.permute.xlu1 %2187 }
 0x3c2   :  { %3737 = vmatmul.msk.f32.vlgmr.msrb.gmra.mxu3 %vm69_vm2, %v3733_v51  ;;  %3739 = vmatmul.msk.f32.vlgmr.msra.gmra.mxu0 %vm69_vm2, %v3733_v51  ;;  %v2194_v11 = vsel %vm393_vm3, %v2186_v60, %v2188_v62 }
 0x3c3   :  { %3746 = vmatpush.msk.msrb.mxu0 %vm73_vm0, %v4375_v44  ;;  %3744 = vmatpush.msk.msra.mxu3 %vm73_vm0, %v1866_v55 }
 0x3c4   :  { %3751 = vmatmul.msk.f32.vlgmr.msrb.gmra.mxu2 %vm69_vm2, %v3732_v27  ;;  %3757 = vmatmul.msk.f32.vlgmr.msra.gmra.mxu1 %vm69_vm2, %v3732_v27 }
 0x3c5   :  { %3754 = vmatpush.msk.msra.mxu0 %vm73_vm0, %v4389_v52  ;;  %3752 = vmatpush.msk.msrb.mxu3 %vm73_vm0, %v4383_v48 }
 0x3c6   :  { %3112 = vrot.lane.b32.xlu0 %v4424_v39, %s3906_s15  ;;  %3289 = vrot.lane.b32.xlu2 %v3280_v3, %s3907_s20  ;;  %v3784_v39 = vld [vmem:[%s4765_s1 + $0x34] sm:$0xf] }
 0x3c7   :  { %v2180_v44 = vpop.permute.xlu0 %2179  ;;  %v2363_v2 = vpop.permute.xlu2 %2362  ;;  %3293 = vrot.lane.b32.xlu1 %v3282_v63, %s3907_s20 }
 0x3c8   :  { %v2190_v52 = vsel %vm393_vm3, %v2178_v56, %v2180_v44 }
 0x3c9   :  { %v2176_v4 = vpop.permute.xlu1 %2175 }
 0x3ca   :  { %3745 = vmatmul.msk.f32.vlgmr.msra.gmra.mxu3 %vm69_vm2, %v3733_v51  ;;  %v2189_v48 = vsel %vm393_vm3, %v2176_v4, %v2178_v56  ;;  %3747 = vmatmul.msk.f32.vlgmr.msrb.gmra.mxu0 %vm69_vm2, %v3732_v27 }
 0x3cb   :  { %3761 = vmatpush.msk.msra.mxu3 %vm73_vm0, %v2190_v52  ;;  %3759 = vmatpush.msk.msra.mxu2 %vm73_vm0, %v2189_v48  ;;  %v3810_v52 = vld [vmem:[%s4765_s1 + $0x3c] sm:$0xf] }
 0x3cc   :  { %3760 = vmatmul.msk.f32.vlgmr.msra.gmra.mxu2 %vm69_vm2, %v3758_v0 }
 0x3ce   :  { %3291 = vrot.lane.b32.xlu0 %v3281_v5, %s3907_s20  ;;  %3295 = vrot.lane.b32.xlu2 %v3283_v6, %s3907_s20 }
 0x3cf   :  { %v2182_v8 = vpop.permute.xlu0 %2181  ;;  %v2365_v9 = vpop.permute.xlu2 %2364  ;;  %3297 = vrot.lane.b32.xlu1 %v3284_v7, %s3907_s20 }
 0x3d0   :  { %v2191_v10 = vsel %vm393_vm3, %v2180_v44, %v2182_v8  ;;  %v2375_v25 = vsel %vm579_vm4, %v2363_v2, %v2365_v9 }
 0x3d1   :  { %3763 = vmatpush.msk.msrb.mxu0 %vm73_vm0, %v2191_v10  ;;  %v2184_v54 = vpop.permute.xlu1 %2183 }
 0x3d2   :  { %3753 = vmatmul.msk.f32.vlgmr.msrb.gmra.mxu3 %vm69_vm2, %v3732_v27  ;;  %v2192_v24 = vsel %vm393_vm3, %v2182_v8, %v2184_v54  ;;  %v2193_v18 = vsel %vm393_vm3, %v2184_v54, %v2186_v60  ;;  %3755 = vmatmul.msk.f32.vlgmr.msra.gmra.mxu0 %vm69_vm2, %v3732_v27  ;;  %v3797_v27 = vld [vmem:[%s4765_s1 + $0x38] sm:$0xf] }
 0x3d3   :  { %3769 = vmatpush.msk.msrb.mxu3 %vm73_vm0, %v2194_v11  ;;  %3765 = vmatpush.msk.msrb.mxu1 %vm73_vm0, %v2192_v24 }
 0x3d4   :  { %3767 = vmatpush.msk.msrb.mxu2 %vm73_vm0, %v2193_v18  ;;  %3766 = vmatmul.msk.f32.vlgmr.msrb.gmra.mxu1 %vm69_vm2, %v3758_v0  ;;  %v3823_v18 = vld [vmem:[%s4765_s1 + $0x40] sm:$0xf] }
 0x3d5   :  { %3774 = vmatpush.msk.msra.mxu1 %vm73_vm0, %v2375_v25  ;;  %3768 = vmatmul.msk.f32.vlgmr.msrb.gmra.mxu2 %vm69_vm2, %v3758_v0 }
 0x3d7   :  { %v2558_v26 = vpop.permute.xlu0 %2557  ;;  %v2548_v28 = vpop.permute.xlu2 %2547 }
 0x3d9   :  { %v2361_v20 = vpop.permute.xlu1 %2360 }
 0x3da   :  { %v2374_v16 = vsel %vm579_vm4, %v2361_v20, %v2363_v2  ;;  %3762 = vmatmul.msk.f32.vlgmr.msra.gmra.mxu3 %vm69_vm2, %v3758_v0  ;;  %3764 = vmatmul.msk.f32.vlgmr.msrb.gmra.mxu0 %vm69_vm2, %v3758_v0 }
 0x3db   :  { %3772 = vmatpush.msk.msra.mxu0 %vm73_vm0, %v2374_v16 }
 0x3dc   :  { %3775 = vmatmul.msk.f32.vlgmr.msra.gmra.mxu1 %vm69_vm2, %v3771_v23 }
 0x3df   :  { %v2367_v30 = vpop.permute.xlu0 %2366  ;;  %v2552_v29 = vpop.permute.xlu2 %2551 }
 0x3e0   :  { %v2376_v32 = vsel %vm579_vm4, %v2365_v9, %v2367_v30 }
 0x3e1   :  { %3776 = vmatpush.msk.msra.mxu2 %vm73_vm0, %v2376_v32  ;;  %v2743_v34 = vpop.permute.xlu1 %2742  ;;  %v3836_v32 = vld [vmem:[%s4765_s1 + $0x44] sm:$0xf] }
 0x3e2   :  { %3770 = vmatmul.msk.f32.vlgmr.msrb.gmra.mxu3 %vm69_vm2, %v3758_v0  ;;  %3777 = vmatmul.msk.f32.vlgmr.msra.gmra.mxu2 %vm69_vm2, %v3771_v23 }
 0x3e3   :  { %3773 = vmatmul.msk.f32.vlgmr.msra.gmra.mxu0 %vm69_vm2, %v3771_v23 }
 0x3e7   :  { %v4542_v35 = vpop.permute.xlu2 %2927  ;;  %v2369_v37 = vpop.permute.xlu0 %2368 }
 0x3e8   :  { %v2377_v33 = vsel %vm579_vm4, %v2367_v30, %v2369_v37 }
 0x3e9   :  { %3778 = vmatpush.msk.msra.mxu3 %vm73_vm0, %v2377_v33  ;;  %v2546_v13 = vpop.permute.xlu1 %2545 }
 0x3ea   :  { %v2559_v41 = vsel %vm765_vm5, %v2546_v13, %v2548_v28  ;;  %3779 = vmatmul.msk.f32.vlgmr.msra.gmra.mxu3 %vm69_vm2, %v3771_v23 }
 0x3eb   :  { %3785 = vmatpush.msk.msrb.mxu2 %vm73_vm0, %v2559_v41 }
 0x3ec   :  { %3786 = vmatmul.msk.f32.vlgmr.msrb.gmra.mxu2 %vm69_vm2, %v3784_v39 }
 0x3ef   :  { %v2737_v42 = vpop.permute.xlu2 %2736  ;;  %v2371_v43 = vpop.permute.xlu0 %2370 }
 0x3f0   :  { %v2378_v49 = vsel %vm579_vm4, %v2369_v37, %v2371_v43  ;;  %v2379_v15 = vsel %vm579_vm4, %v2371_v43, %v4457_v12 }
 0x3f1   :  { %3780 = vmatpush.msk.msrb.mxu0 %vm73_vm0, %v2378_v49  ;;  %3782 = vmatpush.msk.msrb.mxu1 %vm73_vm0, %v2379_v15  ;;  %v2550_v31 = vpop.permute.xlu1 %2549 }
 0x3f2   :  { %3783 = vmatmul.msk.f32.vlgmr.msrb.gmra.mxu1 %vm69_vm2, %v3771_v23  ;;  %3781 = vmatmul.msk.f32.vlgmr.msrb.gmra.mxu0 %vm69_vm2, %v3771_v23  ;;  %v2560_v17 = vsel %vm765_vm5, %v2548_v28, %v2550_v31  ;;  %v2561_v50 = vsel %vm765_vm5, %v2550_v31, %v2552_v29 }
 0x3f3   :  { %3787 = vmatpush.msk.msrb.mxu3 %vm73_vm0, %v2560_v17  ;;  %3789 = vmatpush.msk.msra.mxu0 %vm73_vm0, %v2561_v50 }
 0x3f4   :  { %3788 = vmatmul.msk.f32.vlgmr.msrb.gmra.mxu3 %vm69_vm2, %v3784_v39 }
 0x3f7   :  { %v2554_v51 = vpop.permute.xlu0 %2553  ;;  %v2739_v12 = vpop.permute.xlu2 %2738 }
 0x3f8   :  { %v2562_v40 = vsel %vm765_vm5, %v2552_v29, %v2554_v51  ;;  %v2747_v57 = vsel %vm951_vm6, %v2737_v42, %v2739_v12 }
 0x3f9   :  { %3791 = vmatpush.msk.msra.mxu1 %vm73_vm0, %v2562_v40  ;;  %v2556_v53 = vpop.permute.xlu1 %2555 }
 0x3fa   :  { %3792 = vmatmul.msk.f32.vlgmr.msra.gmra.mxu1 %vm69_vm2, %v3784_v39  ;;  %3790 = vmatmul.msk.f32.vlgmr.msra.gmra.mxu0 %vm69_vm2, %v3784_v39  ;;  %v2563_v46 = vsel %vm765_vm5, %v2554_v51, %v2556_v53  ;;  %v2564_v56 = vsel %vm765_vm5, %v2556_v53, %v2558_v26 }
 0x3fb   :  { %3793 = vmatpush.msk.msra.mxu2 %vm73_vm0, %v2563_v46  ;;  %3795 = vmatpush.msk.msra.mxu3 %vm73_vm0, %v2564_v56 }
 0x3fc   :  { %3794 = vmatmul.msk.f32.vlgmr.msra.gmra.mxu2 %vm69_vm2, %v3784_v39  ;;  %3796 = vmatmul.msk.f32.vlgmr.msra.gmra.mxu3 %vm69_vm2, %v3784_v39 }
 0x3fd   :  { %3804 = vmatpush.msk.msrb.mxu3 %vm73_vm0, %v2747_v57 }
 0x3ff   :  { %v2731_v58 = vpop.permute.xlu0 %2730  ;;  %v2741_v19 = vpop.permute.xlu2 %2740 }
 0x400   :  { %v2748_v60 = vsel %vm951_vm6, %v2739_v12, %v2741_v19  ;;  %v2749_v3 = vsel %vm951_vm6, %v2741_v19, %v2743_v34 }
 0x401   :  { %v2733_v45 = vpop.permute.xlu1 %2732 }
 0x402   :  { %v2744_v59 = vsel %vm951_vm6, %v2731_v58, %v2733_v45 }
 0x403   :  { %3798 = vmatpush.msk.msrb.mxu0 %vm73_vm0, %v2744_v59 }
 0x404   :  { %3799 = vmatmul.msk.f32.vlgmr.msrb.gmra.mxu0 %vm69_vm2, %v3797_v27  ;;  %3805 = vmatmul.msk.f32.vlgmr.msrb.gmra.mxu3 %vm69_vm2, %v3797_v27 }
 0x405   :  { %3806 = vmatpush.msk.msra.mxu0 %vm73_vm0, %v2748_v60 }
 0x407   :  { %v2916_v61 = vpop.permute.xlu0 %2915  ;;  %v2924_v44 = vpop.permute.xlu2 %2923 }
 0x409   :  { %v2735_v47 = vpop.permute.xlu1 %2734 }
 0x40a   :  { %v2745_v62 = vsel %vm951_vm6, %v2733_v45, %v2735_v47  ;;  %v2746_v55 = vsel %vm951_vm6, %v2735_v47, %v2737_v42 }
 0x40b   :  { %3800 = vmatpush.msk.msrb.mxu1 %vm73_vm0, %v2745_v62  ;;  %3802 = vmatpush.msk.msrb.mxu2 %vm73_vm0, %v2746_v55 }
 0x40c   :  { %3801 = vmatmul.msk.f32.vlgmr.msrb.gmra.mxu1 %vm69_vm2, %v3797_v27  ;;  %3803 = vmatmul.msk.f32.vlgmr.msrb.gmra.mxu2 %vm69_vm2, %v3797_v27 }
 0x40d   :  { %3807 = vmatmul.msk.f32.vlgmr.msra.gmra.mxu0 %vm69_vm2, %v3797_v27  ;;  %3808 = vmatpush.msk.msra.mxu1 %vm73_vm0, %v2749_v3 }
 0x40f   :  { %v2920_v63 = vpop.permute.xlu0 %2919 }
 0x410   :  { %v3101_v8 = vpop.permute.xlu2 %3100 }
 0x411   :  { %v2918_v2 = vpop.permute.xlu1 %2917 }
 0x412   :  { %v2929_v4 = vsel %vm1137_vm7, %v2916_v61, %v2918_v2  ;;  %v2930_v48 = vsel %vm1137_vm7, %v2918_v2, %v2920_v63 }
 0x413   :  { %3811 = vmatpush.msk.msra.mxu2 %vm73_vm0, %v2929_v4  ;;  %3813 = vmatpush.msk.msra.mxu3 %vm73_vm0, %v2930_v48 }
 0x414   :  { %3809 = vmatmul.msk.f32.vlgmr.msra.gmra.mxu1 %vm69_vm2, %v3797_v27  ;;  %3812 = vmatmul.msk.f32.vlgmr.msra.gmra.mxu2 %vm69_vm2, %v3810_v52 }
 0x415   :  { %3814 = vmatmul.msk.f32.vlgmr.msra.gmra.mxu3 %vm69_vm2, %v3810_v52 }
 0x417   :  { %v2926_v0 = vpop.permute.xlu0 %2925 }
 0x418   :  { %v2933_v5 = vsel %vm1137_vm7, %v2924_v44, %v2926_v0  ;;  %v2934_v6 = vsel %vm1137_vm7, %v2926_v0, %v4542_v35  ;;  %v3286_v25 = vpop.permute.xlu2 %3285 }
 0x419   :  { %3819 = vmatpush.msk.msrb.mxu2 %vm73_vm0, %v2933_v5  ;;  %3821 = vmatpush.msk.msrb.mxu3 %vm73_vm0, %v2934_v6  ;;  %v2922_v7 = vpop.permute.xlu1 %2921 }
 0x41a   :  { %v2931_v9 = vsel %vm1137_vm7, %v2920_v63, %v2922_v7  ;;  %v2932_v10 = vsel %vm1137_vm7, %v2922_v7, %v2924_v44 }
 0x41b   :  { %3815 = vmatpush.msk.msrb.mxu0 %vm73_vm0, %v2931_v9  ;;  %3817 = vmatpush.msk.msrb.mxu1 %vm73_vm0, %v2932_v10 }
 0x41c   :  { %3816 = vmatmul.msk.f32.vlgmr.msrb.gmra.mxu0 %vm69_vm2, %v3810_v52  ;;  %3818 = vmatmul.msk.f32.vlgmr.msrb.gmra.mxu1 %vm69_vm2, %v3810_v52 }
 0x41d   :  { %3820 = vmatmul.msk.f32.vlgmr.msrb.gmra.mxu2 %vm69_vm2, %v3810_v52  ;;  %3822 = vmatmul.msk.f32.vlgmr.msrb.gmra.mxu3 %vm69_vm2, %v3810_v52 }
 0x41f   :  { %v3103_v54 = vpop.permute.xlu0 %3102 }
 0x420   :  { %v3114_v11 = vsel %vm1323_vm8, %v3101_v8, %v3103_v54  ;;  %v3290_v30 = vpop.permute.xlu2 %3289 }
 0x421   :  { %3824 = vmatpush.msk.msra.mxu0 %vm73_vm0, %v3114_v11  ;;  %v3107_v24 = vpop.permute.xlu1 %3106 }
 0x424   :  { %3825 = vmatmul.msk.f32.vlgmr.msra.gmra.mxu0 %vm69_vm2, %v3823_v18 }
 0x427   :  { %v3105_v26 = vpop.permute.xlu0 %3104 }
 0x428   :  { %v3115_v28 = vsel %vm1323_vm8, %v3103_v54, %v3105_v26  ;;  %v3116_v20 = vsel %vm1323_vm8, %v3105_v26, %v3107_v24  ;;  %v3296_v41 = vpop.permute.xlu2 %3295 }
 0x429   :  { %3826 = vmatpush.msk.msra.mxu1 %vm73_vm0, %v3115_v28  ;;  %3828 = vmatpush.msk.msra.mxu2 %vm73_vm0, %v3116_v20  ;;  %v3109_v16 = vpop.permute.xlu1 %3108 }
 0x42a   :  { %3827 = vmatmul.msk.f32.vlgmr.msra.gmra.mxu1 %vm69_vm2, %v3823_v18  ;;  %3829 = vmatmul.msk.f32.vlgmr.msra.gmra.mxu2 %vm69_vm2, %v3823_v18  ;;  %v3117_v23 = vsel %vm1323_vm8, %v3107_v24, %v3109_v16 }
 0x42b   :  { %3830 = vmatpush.msk.msra.mxu3 %vm73_vm0, %v3117_v23 }
 0x42c   :  { %3831 = vmatmul.msk.f32.vlgmr.msra.gmra.mxu3 %vm69_vm2, %v3823_v18 }
 0x42e   :  { %v1899_v39 = vpop.f32.mrf.mxu2 }
 0x42f   :  { %v3288_v29 = vpop.permute.xlu0 %3287 }
 0x430   :  { %v3299_v34 = vsel %vm1509_vm9, %v3286_v25, %v3288_v29  ;;  %v3300_v35 = vsel %vm1509_vm9, %v3288_v29, %v3290_v30 }
 0x431   :  { %3837 = vmatpush.msk.msrb.mxu2 %vm73_vm0, %v3299_v34  ;;  %3839 = vmatpush.msk.msrb.mxu3 %vm73_vm0, %v3300_v35  ;;  %v3111_v37 = vpop.permute.xlu1 %3110  ;;  %v1959_v49 = vpop.f32.mrf.mxu1 }
 0x432   :  { %3838 = vmatmul.msk.f32.vlgmr.msrb.gmra.mxu2 %vm69_vm2, %v3836_v32  ;;  %v3118_v33 = vsel %vm1323_vm8, %v3109_v16, %v3111_v37 }
 0x433   :  { %3832 = vmatpush.msk.msrb.mxu0 %vm73_vm0, %v3118_v33 }
 0x434   :  { %3833 = vmatmul.msk.f32.vlgmr.msrb.gmra.mxu0 %vm69_vm2, %v3823_v18  ;;  %3840 = vmatmul.msk.f32.vlgmr.msrb.gmra.mxu3 %vm69_vm2, %v3836_v32 }
 0x438   :  { %v3113_v13 = vpop.permute.xlu0 %3112 }
 0x439   :  { %v3119_v42 = vsel %vm1323_vm8, %v3111_v37, %v3113_v13  ;;  %v3294_v43 = vpop.permute.xlu1 %3293  ;;  %v2068_v46 = vpop.f32.mrf.mxu1 }
 0x43a   :  { %3834 = vmatpush.msk.msrb.mxu1 %vm73_vm0, %v3119_v42  ;;  %v3303_v15 = vsel %vm1509_vm9, %v3294_v43, %v3296_v41 }
 0x43b   :  { %3835 = vmatmul.msk.f32.vlgmr.msrb.gmra.mxu1 %vm69_vm2, %v3823_v18  ;;  %3845 = vmatpush.msk.msra.mxu2 %vm73_vm0, %v3303_v15 }
 0x43c   :  { %3846 = vmatmul.msk.f32.vlgmr.msra.gmra.mxu2 %vm69_vm2, %v3836_v32 }
 0x43f   :  { %v1939_v51 = vpop.f32.mrf.mxu0  ;;  %v1979_v40 = vpop.f32.mrf.mxu2 }
 0x440   :  { %v3292_v31 = vpop.permute.xlu0 %3291 }
 0x441   :  { %v3301_v17 = vsel %vm1509_vm9, %v3290_v30, %v3292_v31  ;;  %v3302_v50 = vsel %vm1509_vm9, %v3292_v31, %v3294_v43  ;;  %v3298_v12 = vpop.permute.xlu1 %3297  ;;  %v2148_v60 = vpop.f32.mrf.mxu1 }
 0x442   :  { %3841 = vmatpush.msk.msra.mxu0 %vm73_vm0, %v3301_v17  ;;  %3843 = vmatpush.msk.msra.mxu1 %vm73_vm0, %v3302_v50  ;;  %v3304_v53 = vsel %vm1509_vm9, %v3296_v41, %v3298_v12  ;;  %v3528_v12 = vld [vmem:[%s4764_s0] sm:$0xff] }
 0x443   :  { %3842 = vmatmul.msk.f32.vlgmr.msra.gmra.mxu0 %vm69_vm2, %v3836_v32  ;;  %3844 = vmatmul.msk.f32.vlgmr.msra.gmra.mxu1 %vm69_vm2, %v3836_v32  ;;  %3536 = vst [vmem:[#allocation1] ss:$2 sm:$0xff] %v3528_v12 }
 0x444   :  { %3847 = vmatpush.msk.msra.mxu3 %vm73_vm0, %v3304_v53 }
 0x445   :  { %3848 = vmatmul.msk.f32.vlgmr.msra.gmra.mxu3 %vm69_vm2, %v3836_v32  ;;  %v1919_v56 = vpop.f32.mrf.mxu3 }
 0x446   :  { %v2069_v57 = vadd.f32 %v2068_v46, %v1919_v56  ;;  %v3912_v46 = vmov 3  }
 0x447   :  { %v2048_v58 = vpop.f32.mrf.mxu0  ;;  %v2088_v45 = vpop.f32.mrf.mxu2  ;;  %3866 = vset.pattern.permute.xlu1 %v3912_v46  ;;  %3868 = vset.pattern.permute.xlu0 %v3912_v46 }
 0x448   :  { %v2049_v19 = vadd.f32 %v2048_v58, %v1899_v39  ;;  %v2089_v27 = vadd.f32 %v2088_v45, %v1939_v51 }
 0x44d   :  { %v1999_v59 = vpop.f32.mrf.mxu3 }
 0x44e   :  { %v4660_v61 = vadd.f32 %v2148_v60, %v1999_v59 }
 0x44f   :  { %v2128_v47 = vpop.f32.mrf.mxu0  ;;  %v2227_v63 = vpop.f32.mrf.mxu2 }
 0x450   :  { %v2129_v62 = vadd.f32 %v2128_v47, %v1979_v40  ;;  %v2330_v13 = vadd.f32 %v2227_v63, %v2049_v19 }
 0x451   :  { %v2287_v2 = vpop.f32.mrf.mxu1 }
 0x455   :  { %v2108_v55 = vpop.f32.mrf.mxu3 }
 0x456   :  { %v2109_v3 = vadd.f32 %v2108_v55, %v1959_v49 }
 0x457   :  { %v2267_v52 = vpop.f32.mrf.mxu0 }
 0x458   :  { %v2307_v4 = vpop.f32.mrf.mxu2  ;;  %v2332_v40 = vadd.f32 %v2267_v52, %v2089_v27  ;;  %v2333_v58 = vadd.f32 %v2287_v2, %v2109_v3 }
 0x459   :  { %v2432_v0 = vpop.f32.mrf.mxu1  ;;  %v2334_v45 = vadd.f32 %v2307_v4, %v2129_v62 }
 0x45d   :  { %v2247_v44 = vpop.f32.mrf.mxu3 }
 0x45e   :  { %v2331_v39 = vadd.f32 %v2247_v44, %v2069_v57  ;;  %v4678_v57 = vld [vmem:[%s4766_s2] sm:$0xf] }
 0x45f   :  { %3519 = vperm.xlu1 %3866, %v4678_v57  }
 0x460   :  { %v2412_v5 = vpop.f32.mrf.mxu0  ;;  %v2516_v43 = vadd.f32 %v2432_v0, %v2331_v39 }
 0x461   :  { %v2515_v41 = vadd.f32 %v2412_v5, %v2330_v13 }
 0x465   :  { %v4662_v48 = vpop.f32.mrf.mxu3  ;;  %v2452_v6 = vpop.f32.mrf.mxu2 }
 0x466   :  { %v2517_v47 = vadd.f32 %v2452_v6, %v2332_v40  ;;  %v2335_v4 = vadd.f32 %v4662_v48, %v4660_v61 }
 0x46d   :  { %v2472_v7 = vpop.f32.mrf.mxu3 }
 0x46e   :  { %v2518_v27 = vadd.f32 %v2472_v7, %v2333_v58 }
 0x46f   :  { %v4664_v8 = vpop.f32.mrf.mxu1  ;;  %v2492_v9 = vpop.f32.mrf.mxu0 }
 0x470   :  { %v2597_v10 = vpop.f32.mrf.mxu2  ;;  %v2519_v44 = vadd.f32 %v2492_v9, %v2334_v45 }
 0x471   :  { %v2700_v15 = vadd.f32 %v2597_v10, %v2515_v41 }
 0x477   :  { %v2617_v54 = vpop.f32.mrf.mxu3  ;;  %v2637_v24 = vpop.f32.mrf.mxu0 }
 0x478   :  { %v2657_v18 = vpop.f32.mrf.mxu1  ;;  %v2701_v50 = vadd.f32 %v2617_v54, %v2516_v43  ;;  %v2702_v54 = vadd.f32 %v2637_v24, %v2517_v47 }
 0x479   :  { %v2703_v10 = vadd.f32 %v2657_v18, %v2518_v27  ;;  %v2520_v18 = vadd.f32 %v4664_v8, %v2335_v4 }
 0x47f   :  { %v2677_v11 = vpop.f32.mrf.mxu2  ;;  %v4666_v25 = vpop.f32.mrf.mxu3 }
 0x481   :  { %v2782_v28 = vpop.f32.mrf.mxu0 }
 0x482   :  { %v2885_v51 = vadd.f32 %v2782_v28, %v2700_v15 }
 0x487   :  { %v2842_v16 = vpop.f32.mrf.mxu3 }
 0x488   :  { %v2888_v3 = vadd.f32 %v2842_v16, %v2703_v10 }
 0x489   :  { %v2802_v20 = vpop.f32.mrf.mxu1 }
 0x48a   :  { %v2862_v30 = vpop.f32.mrf.mxu0  ;;  %v2886_v53 = vadd.f32 %v2802_v20, %v2701_v50  ;;  %v2704_v20 = vadd.f32 %v2677_v11, %v2519_v44 }
 0x48c   :  { %v2889_v6 = vadd.f32 %v2862_v30, %v2704_v20 }
 0x48f   :  { %v2822_v26 = vpop.f32.mrf.mxu2 }
 0x490   :  { %v2887_v2 = vadd.f32 %v2822_v26, %v2702_v54 }
 0x491   :  { %v4668_v29 = vpop.f32.mrf.mxu1 }
 0x497   :  { %v2967_v23 = vpop.f32.mrf.mxu2 }
 0x498   :  { %v2987_v32 = vpop.f32.mrf.mxu3  ;;  %v3070_v56 = vadd.f32 %v2967_v23, %v2885_v51  ;;  %v3544_v23 = vld.sshfl [vmem:[#allocation1 + $0x8] sm:$0xff pattern:$0x75316420] }
 0x499   :  { %v3007_v34 = vpop.f32.mrf.mxu0  ;;  %v3027_v37 = vpop.f32.mrf.mxu1  ;;  %v3071_v19 = vadd.f32 %v2987_v32, %v2886_v53  ;;  %3552 = vrot.lane.b32.xlu1 %v3544_v23, %s3903_s8  ;;  %v3531_v23 = vld [vmem:[%s4764_s0 + $0x18] sm:$0xf] }
 0x49a   :  { %v3072_v9 = vadd.f32 %v3007_v34, %v2887_v2  ;;  %v3073_v24 = vadd.f32 %v3027_v37, %v2888_v3  ;;  %v3530_v3 = vld [vmem:[%s4764_s0 + $0x10] sm:$0xff]  ;;  %3542 = vst [vmem:[#allocation1 + $0x30] ss:$2 sm:$0xff] %v3531_v23  ;;  %v3913_v2 = vmov 2  }
 0x49b   :  { %3540 = vst [vmem:[#allocation1 + $0x20] ss:$2 sm:$0xff] %v3530_v3  ;;  %3867 = vset.pattern.permute.xlu1 %v3913_v2 }
 0x4a0   :  { %v3047_v35 = vpop.f32.mrf.mxu2  ;;  %v4670_v33 = vpop.f32.mrf.mxu3 }
 0x4a1   :  { %v3152_v49 = vpop.f32.mrf.mxu0  ;;  %v3074_v11 = vadd.f32 %v3047_v35, %v2889_v6 }
 0x4a2   :  { %v3255_v59 = vadd.f32 %v3152_v49, %v3070_v56  ;;  %v3548_v4 = vld.sshfl [vmem:[#allocation1 + $0x28] sm:$0xff pattern:$0x75316420] }
 0x4a7   :  { %v3172_v31 = vpop.f32.mrf.mxu1 }
 0x4a8   :  { %v3256_v55 = vadd.f32 %v3172_v31, %v3071_v19 }
 0x4ad   :  { %v3192_v42 = vpop.f32.mrf.mxu2 }
 0x4ae   :  { %v3257_v32 = vadd.f32 %v3192_v42, %v3072_v9 }
 0x4af   :  { %v3212_v17 = vpop.f32.mrf.mxu3 }
 0x4b0   :  { %v3258_v16 = vadd.f32 %v3212_v17, %v3073_v24 }
 0x4b1   :  { %v3232_v63 = vpop.f32.mrf.mxu0 }
 0x4b2   :  { %v3259_v61 = vadd.f32 %v3232_v63, %v3074_v11 }
 0x4b5   :  { %v3337_v60 = vpop.f32.mrf.mxu2 }
 0x4b6   :  { %v4681_v52 = vadd.f32 %v3337_v60, %v3255_v59 }
 0x4b7   :  { %v3357_v5 = vpop.f32.mrf.mxu3 }
 0x4b8   :  { %v3252_v0 = vpop.f32.mrf.mxu1  ;;  %v4683_v28 = vadd.f32 %v3357_v5, %v3256_v55  ;;  %v3446_v7 = vmul.f32 %v4681_v52, %v4276_v21 }
 0x4ba   :  { %v3447_v62 = vmul.f32 %v4683_v28, %v4274_v22  ;;  %v2705_v22 = vadd.f32 %v4666_v25, %v2520_v18  ;;  %v3465_v13 = vmul.f32 %v3446_v7, %v4681_v52  ;;  %v3452_v41 = vsel %vm73_vm0, %v3446_v7, 0.0 }
 0x4bc   :  { %v3466_v26 = vmul.f32 %v3447_v62, %v4683_v28  ;;  %v3453_v21 = vsel %vm73_vm0, %v3447_v62, 0.0  ;;  %v2890_v8 = vadd.f32 %v4668_v29, %v2705_v22  ;;  %v3471_v15 = vsel %vm73_vm0, %v3465_v13, 0.0  ;;  %v3549_v62 = vld.sshfl [vmem:[#allocation1 + $0x30] sm:$0xff pattern:$0x75316420] }
 0x4bd   :  { %v3454_v31 = vadd.f32 %v3453_v21, %v3452_v41  ;;  %v3543_v41 = vld.sshfl [vmem:[#allocation1] sm:$0xff pattern:$0x75316420] }
 0x4be   :  { %v3472_v25 = vsel %vm73_vm0, %v3466_v26, 0.0  ;;  %v3075_v49 = vadd.f32 %v4670_v33, %v2890_v8 }
 0x4bf   :  { %v3417_v37 = vpop.f32.mrf.mxu2  ;;  %v3473_v12 = vadd.f32 %v3472_v25, %v3471_v15 }
 0x4c0   :  { %v3377_v48 = vpop.f32.mrf.mxu0  ;;  %v3397_v30 = vpop.f32.mrf.mxu1  ;;  %v4702_v35 = vadd.f32 %v3417_v37, %v3259_v61 }
 0x4c1   :  { %v4697_v39 = vadd.f32 %v3377_v48, %v3257_v32  ;;  %v4699_v34 = vadd.f32 %v3397_v30, %v3258_v16  ;;  %v3547_v16 = vld.sshfl [vmem:[#allocation1 + $0x20] sm:$0xff pattern:$0x75316420] }
 0x4c2   :  { %v3450_v51 = vmul.f32 %v4702_v35, %v4297_v38 }
 0x4c3   :  { %v3448_v42 = vmul.f32 %v4697_v39, %v4270_v1  ;;  %v3449_v43 = vmul.f32 %v4699_v34, %v4288_v14  ;;  %v3260_v1 = vadd.f32 %v3252_v0, %v3075_v49 }
 0x4c4   :  { %v3469_v58 = vmul.f32 %v3450_v51, %v4702_v35  ;;  %v3459_v60 = vsel %vm73_vm0, %v3450_v51, 0.0 }
 0x4c5   :  { %v3455_v17 = vsel %vm73_vm0, %v3448_v42, 0.0  ;;  %v3467_v29 = vmul.f32 %v3448_v42, %v4697_v39  ;;  %v3468_v50 = vmul.f32 %v3449_v43, %v4699_v34  ;;  %v3457_v14 = vsel %vm73_vm0, %v3449_v43, 0.0 }
 0x4c6   :  { %v3456_v40 = vadd.f32 %v3455_v17, %v3454_v31  ;;  %v3478_v63 = vsel %vm73_vm0, %v3469_v58, 0.0 }
 0x4c7   :  { %v3474_v53 = vsel %vm73_vm0, %v3467_v29, 0.0  ;;  %v3476_v45 = vsel %vm73_vm0, %v3468_v50, 0.0 }
 0x4c8   :  { %v3437_v33 = vpop.f32.mrf.mxu3  ;;  %v3458_v46 = vadd.f32 %v3457_v14, %v3456_v40  ;;  %v3475_v56 = vadd.f32 %v3474_v53, %v3473_v12 }
 0x4c9   :  { %v4720_v19 = vadd.f32 %v3437_v33, %v3260_v1 }
 0x4ca   :  { %v3477_v59 = vadd.f32 %v3476_v45, %v3475_v56  ;;  %v3460_v47 = vadd.f32 %v3459_v60, %v3458_v46 }
 0x4cb   :  { %v3451_v38 = vmul.f32 %v4720_v19, %v4300_v36  ;;  %v3529_v36 = vld [vmem:[%s4764_s0 + $0x8] sm:$0xff]  ;;  %s3914_s0 = smov [#allocation3]  }
 0x4cc   :  { %v3479_v0 = vadd.f32 %v3478_v63, %v3477_v59  ;;  %3538 = vst [vmem:[#allocation1 + $0x10] ss:$2 sm:$0xff] %v3529_v36 }
 0x4cd   :  { %v3461_v27 = vsel %vm73_vm0, %v3451_v38, 0.0  ;;  %v3470_v55 = vmul.f32 %v3451_v38, %v4720_v19 }
 0x4ce   :  { %v3462_v44 = vadd.f32 %v3461_v27, %v3460_v47 }
 0x4cf   :  { %v3480_v5 = vsel %vm73_vm0, %v3470_v55, 0.0 }
 0x4d0   :  { %3463 = vadd.xlane.f32.xlu2 %v3462_v44  ;;  %v3481_v10 = vadd.f32 %v3480_v5, %v3479_v0 }
 0x4d1   :  { %v3520_v25 = vpop.permute.xlu1 %3519 }
 0x4d2   :  { %3482 = vadd.xlane.f32.xlu0 %v3481_v10 }
 0x4d3   :  { %v3545_v54 = vld.sshfl [vmem:[#allocation1 + $0x10] sm:$0xff pattern:$0x75316420]  ;;  %v3546_v20 = vld.sshfl [vmem:[#allocation1 + $0x18] sm:$0xff pattern:$0x75316420] }
 0x4d4   :  { %3554 = vrot.lane.b32.xlu1 %v3545_v54, %s3903_s8 }
 0x4dc   :  { %3556 = vrot.lane.b32.xlu1 %v3546_v20, %s3903_s8 }
 0x4e4   :  { %3562 = vrot.lane.b32.xlu1 %v3549_v62, %s3903_s8 }
 0x4e6   :  { %3560 = vrot.lane.b32.xlu0 %v3548_v4, %s3903_s8 }
 0x4e8   :  { %3558 = vrot.lane.b32.xlu2 %v3547_v16, %s3903_s8 }
 0x50b   :  { %v3553_v42 = vpop.permute.xlu1 %3552 }
 0x543   :  { %v3464_v6 = vpop.xlane.xlu2 %3463 }
 0x544   :  { %v3484_v7 = vmul.f32 0.001953125, %v3464_v6 }
 0x545   :  { %v3483_v9 = vpop.xlane.xlu0 %3482 }
 0x546   :  { %v3485_v24 = vmul.f32 0.001953125, %v3483_v9  ;;  %v3486_v18 = vmul.f32 %v3484_v7, %v3484_v7  ;;  %v3555_v43 = vpop.permute.xlu1 %3554  ;;  %v3502_v31 = vsub.f32 %v4683_v28, %v3484_v7  ;;  %v3503_v17 = vsub.f32 %v4697_v39, %v3484_v7 }
 0x547   :  { %v3504_v29 = vsub.f32 %v4699_v34, %v3484_v7  ;;  %v3505_v50 = vsub.f32 %v4702_v35, %v3484_v7  ;;  %v3506_v51 = vsub.f32 %v4720_v19, %v3484_v7  ;;  %v3501_v56 = vsub.f32 %v4681_v52, %v3484_v7 }
 0x548   :  { %v3487_v11 = vsub.f32 %v3485_v24, %v3486_v18  ;;  %v3565_v19 = vsel %vm765_vm5, %v3553_v42, %v3555_v43 }
 0x54a   :  { %v3488_v32 = vmax.f32 %v3487_v11, 0.0 }
 0x54b   :  { %v3559_v12 = vpop.permute.xlu2 %3558 }
 0x54c   :  { %v3489_v26 = vadd.f32 1e-05, %v3488_v32 }
 0x54e   :  { %3871 = vrsqrt.f32 %v3489_v26  ;;  %vm3496_vm2 = vweird.f32 %v3489_v26  ;;  %v3557_v49 = vpop.permute.xlu1 %3556 }
 0x54f   :  { %v3567_v39 = vsel %vm765_vm5, %v3557_v49, %v3559_v12  ;;  %v3566_v27 = vsel %vm765_vm5, %v3555_v43, %v3557_v49 }
 0x554   :  { %v3872_v22 = vpop.eup %3871 }
 0x555   :  { %v3491_v13 = vmul.f32 %v3872_v22, %v3489_v26  ;;  %vm3497_vm1 = vweird.f32 %v3872_v22 }
 0x556   :  { %vm3498_vm3 = vmor %vm3496_vm2, %vm3497_vm1  ;;  %v3563_v15 = vpop.permute.xlu1 %3562 }
 0x557   :  { %v3492_v61 = vmul.f32 %v3872_v22, %v3491_v13 }
 0x558   :  { %v3561_v33 = vpop.permute.xlu0 %3560 }
 0x559   :  { %v3493_v48 = vmul.f32 0.5, %v3492_v61  ;;  %v3568_v38 = vsel %vm765_vm5, %v3559_v12, %v3561_v33  ;;  %v3569_v60 = vsel %vm765_vm5, %v3561_v33, %v3563_v15 }
 0x55b   :  { %v3494_v30 = vsub.f32 1.5, %v3493_v48 }
 0x55d   :  { %v3495_v21 = vmul.f32 %v3872_v22, %v3494_v30 }
 0x55f   :  { %v3499_v37 = vsel %vm3498_vm3, %v3872_v22, %v3495_v21 }
 0x560   :  { %v3500_v8 = vmul.f32 %v4678_v57, %v3499_v37 }
 0x562   :  { %3509 = vperm.xlu1 %3867, %v3500_v8  }
 0x56a   :  { %3550 = vrot.lane.b32.xlu1 %v3543_v41, %s3903_s8  ;;  %s3605_s8 = sshll.u32 %s3914_s0, 4  ;;  %s3606_s8 = int_to_ptr.vmem [resolvable:$true] %s3605_s8 }
 0x5d4   :  { %v3510_v57 = vpop.permute.xlu1 %3509 }
 0x5d5   :  { %v3513_v40 = vmul.f32 %v3510_v57, %v3502_v31  ;;  %v3514_v1 = vmul.f32 %v3510_v57, %v3503_v17  ;;  %v3515_v53 = vmul.f32 %v3510_v57, %v3504_v29  ;;  %v3516_v14 = vmul.f32 %v3510_v57, %v3505_v50 }
 0x5d6   :  { %v3517_v46 = vmul.f32 %v3510_v57, %v3506_v51  ;;  %v3512_v35 = vmul.f32 %v3510_v57, %v3501_v56 }
 0x5d7   :  { %v3523_v58 = vadd.f32 %v3520_v25, %v3513_v40  ;;  %v3524_v28 = vadd.f32 %v3520_v25, %v3514_v1  ;;  %v3525_v45 = vadd.f32 %v3520_v25, %v3515_v53  ;;  %v3526_v34 = vadd.f32 %v3520_v25, %v3516_v14 }
 0x5d8   :  { %v3527_v59 = vadd.f32 %v3520_v25, %v3517_v46  ;;  %v3522_v0 = vadd.f32 %v3520_v25, %v3512_v35 }
 0x5d9   :  { %v3579_v47 = vadd.f32 %v3567_v39, %v3525_v45  ;;  %v3577_v55 = vadd.f32 %v3565_v19, %v3523_v58  ;;  %v3578_v52 = vadd.f32 %v3566_v27, %v3524_v28  ;;  %v3580_v10 = vadd.f32 %v3568_v38, %v3526_v34 }
 0x5da   :  { %v3581_v63 = vadd.f32 %v3569_v60, %v3527_v59 }
 0x5db   :  { %v3589_v44 = vrot.slane %v3579_v47, 4  ;;  %v3588_v23 = vrot.slane %v3577_v55, 4 }
 0x5dc   :  { %v3551_v5 = vpop.permute.xlu1 %3550  ;;  %v3590_v36 = vrot.slane %v3581_v63, 4 }
 0x5dd   :  { %v3564_v54 = vsel %vm765_vm5, %v3551_v5, %v3553_v42  ;;  %v3592_v20 = vsel %vm73_vm0, %v3578_v52, %v3589_v44 }
 0x5de   :  { %v3576_v3 = vadd.f32 %v3564_v54, %v3522_v0  ;;  %v3593_v2 = vsel %vm73_vm0, %v3580_v10, %v3590_v36  ;;  %3598 = vst [vmem:[#allocation3 + $0x8] sm:$0xff] %v3592_v20 }
 0x5df   :  { %3599 = vst [vmem:[#allocation3 + $0x10] sm:$0xff] %v3593_v2 }
 0x5e0   :  { %v3591_v62 = vsel %vm73_vm0, %v3576_v3, %v3588_v23 }
 0x5e1   :  { %3597 = vst [vmem:[#allocation3] sm:$0xff] %v3591_v62 }
 0x5e2   :  { %3610 = dma.vmem_to_hbm [thread:$0]  %s3606_s8, 384, %s3608_s29, [#allocation4]  }
 0x5e3   :  { %3898 = dma.done.wait [#allocation4], 384  }
 0x5e4   :  { %3899 = vsyncadd [#allocation4], 4294966912 }
 0x5e5   :  { %3615 = vsyncpa [#allocation4], 1 }

</bundles_post_ra>
